<compile_context>
chip_gen: v7x
topology: tpu7x:2x2x1
jax: 0.10.0
libtpu: 0.0.40
codegen_flags: <defaults>
</compile_context>

<pallas_src>
import functools

import jax
import jax.numpy as jnp
from jax.experimental import pallas as pl
from jax.experimental.pallas import tpu as pltpu

F32 = jnp.float32

_VMEM_LIMIT = 32 * 1024 * 1024          # scoped VMEM limit (safe on v5e/v6e/v7x)
_FUSED_BUDGET = 16 * 1024 * 1024        # working-set bound for the fused path
_SLAB_BUDGET = 12 * 1024 * 1024         # double-buffered slab budget (streaming path)


def _ceil_div(a, b):
    return -(-a // b)


def _node_tile(n_nodes, bytes_per_row_buffered, budget_bytes, align=32):
    """Largest node tile (multiple of `align`, or full N) fitting the budget."""
    t = int(budget_bytes // max(1, bytes_per_row_buffered))
    if t >= n_nodes:
        return n_nodes
    t = (t // align) * align
    if t == 0:
        t = min(align, n_nodes)
    return min(t, n_nodes)


# --------------------------------------------------------------------------- #
# Fused path: z resident in VMEM, single kernel, single HBM read of z          #
# --------------------------------------------------------------------------- #
def _fused_kernel(z_ref, w1_ref, b1_ref, q_ref, out_ref, beta_ref,
                  *, num_meta, num_nodes, feat_dim):
    # z_ref: (N, M*D) lane-dense slab; w1: (D, H); b1, q: (1, H)
    w1 = w1_ref[...]
    b1 = b1_ref[...]
    q = q_ref[...]

    # ---- phase 1: per-metapath logits (dense MXU matmul per lane slice) ----
    # TODO(synk): Dropout(p=0.6) is eval-mode identity (training would need pltpu.prng_*).
    mids = jax.lax.broadcasted_iota(jnp.int32, (1, num_meta), 1)
    scores = jnp.zeros((1, num_meta), F32)
    for mm in range(num_meta):
        zm = z_ref[:, mm * feat_dim:(mm + 1) * feat_dim].astype(F32)       # (N, D)
        h = jnp.tanh(jnp.dot(zm, w1, preferred_element_type=F32) + b1)     # (N, H)
        hsum = jnp.sum(h, axis=0, keepdims=True)                           # (1, H)
        s_m = jnp.sum(hsum * q, axis=-1, keepdims=True)                    # (1, 1)
        scores = jnp.where(mids == mm, s_m, scores)                        # lane mm

    w_mean = scores * (1.0 / num_nodes)
    w_max = jnp.max(w_mean, axis=-1, keepdims=True)
    e = jnp.exp(w_mean - w_max)
    beta = e / jnp.sum(e, axis=-1, keepdims=True)                          # (1, M)
    beta_ref[...] = beta.astype(beta_ref.dtype)

    # ---- phase 2: beta-weighted metapath mix on the resident slab ----------
    acc = beta[:, 0:1] * z_ref[:, 0:feat_dim].astype(F32)
    for mm in range(1, num_meta):
        acc = acc + beta[:, mm:mm + 1] * z_ref[:, mm * feat_dim:(mm + 1) * feat_dim].astype(F32)
    out_ref[...] = acc.astype(out_ref.dtype)


def _semantic_attention_fused(zrow, w1, b1, q, n, m, d):
    hdim = w1.shape[1]
    out, beta_row = pl.pallas_call(
        functools.partial(_fused_kernel, num_meta=m, num_nodes=n, feat_dim=d),
        out_shape=(jax.ShapeDtypeStruct((n, d), zrow.dtype),
                   jax.ShapeDtypeStruct((1, m), F32)),
        compiler_params=pltpu.CompilerParams(vmem_limit_bytes=_VMEM_LIMIT),
    )(zrow, w1, b1, q)
    return out, beta_row


# --------------------------------------------------------------------------- #
# Streaming path (large z): kernel 1 = per-metapath score partial sums         #
# --------------------------------------------------------------------------- #
def _scores_kernel(z_ref, w1_ref, b1_ref, q_ref, psum_ref,
                   *, num_meta, feat_dim, tile_rows, num_nodes,
                   tiles_per_core, needs_mask):
    c = pl.program_id(0)          # megacore split ("parallel")
    k = pl.program_id(1)          # node-tile reduction ("arbitrary")

    @pl.when(k == 0)
    def _():
        psum_ref[...] = jnp.zeros_like(psum_ref)

    w1 = w1_ref[...]
    b1 = b1_ref[...]
    q = q_ref[...]

    if needs_mask:
        base = (c * tiles_per_core + k) * tile_rows
        rows = base + jax.lax.broadcasted_iota(jnp.int32, (tile_rows, 1), 0)
        valid = rows < num_nodes                                           # (tn, 1)

    mids = jax.lax.broadcasted_iota(jnp.int32, (1, num_meta), 1)
    contrib = jnp.zeros((1, num_meta), F32)
    for mm in range(num_meta):
        zm = z_ref[:, mm * feat_dim:(mm + 1) * feat_dim].astype(F32)       # (tn, D)
        h = jnp.tanh(jnp.dot(zm, w1, preferred_element_type=F32) + b1)     # (tn, H)
        if needs_mask:
            h = jnp.where(valid, h, 0.0)
        hsum = jnp.sum(h, axis=0, keepdims=True)                           # (1, H)
        s_m = jnp.sum(hsum * q, axis=-1, keepdims=True)                    # (1, 1)
        contrib = jnp.where(mids == mm, s_m, contrib)

    psum_ref[...] += contrib.reshape(1, 1, num_meta)


def _scores_two_pass(zrow, w1, b1, q, n, m, d):
    hdim = w1.shape[1]
    row_bytes = 2 * m * d * zrow.dtype.itemsize            # double-buffered slab
    tn = _node_tile(n, row_bytes, _SLAB_BUDGET)
    total_tiles = _ceil_div(n, tn)
    if total_tiles >= 2 and total_tiles % 2 == 0:
        n_cores, nk = 2, total_tiles // 2                   # v7x megacore split
    else:
        n_cores, nk = 1, total_tiles
    needs_mask = (total_tiles * tn) != n

    psums = pl.pallas_call(
        functools.partial(_scores_kernel, num_meta=m, feat_dim=d, tile_rows=tn,
                          num_nodes=n, tiles_per_core=nk, needs_mask=needs_mask),
        out_shape=jax.ShapeDtypeStruct((n_cores, 1, m), F32),
        grid=(n_cores, nk),
        in_specs=[
            pl.BlockSpec((tn, m * d), lambda c, k, _nk=nk: (c * _nk + k, 0)),
            pl.BlockSpec((d, hdim), lambda c, k: (0, 0)),    # W1 (resident)
            pl.BlockSpec((1, hdim), lambda c, k: (0, 0)),    # b1
            pl.BlockSpec((1, hdim), lambda c, k: (0, 0)),    # q
        ],
        out_specs=pl.BlockSpec((1, 1, m), lambda c, k: (c, 0, 0)),
        compiler_params=pltpu.CompilerParams(
            dimension_semantics=("parallel", "arbitrary"),
            vmem_limit_bytes=_VMEM_LIMIT),
    )(zrow, w1, b1, q)

    w_mean = jnp.sum(psums, axis=(0, 1)) / n                 # (M,)
    beta = jax.nn.softmax(w_mean)                            # (M,) tiny epilogue
    return beta


# --------------------------------------------------------------------------- #
# Streaming path: kernel 2 = out[n, :] = sum_m beta[m] * z[n, m, :]            #
# --------------------------------------------------------------------------- #
def _mix_kernel(beta_ref, z_ref, out_ref, *, num_meta, feat_dim):
    acc = beta_ref[0, 0] * z_ref[:, 0:feat_dim].astype(F32)
    for mm in range(1, num_meta):
        acc = acc + beta_ref[0, mm] * z_ref[:, mm * feat_dim:(mm + 1) * feat_dim].astype(F32)
    out_ref[...] = acc.astype(out_ref.dtype)


def _mix_two_pass(beta_row, zrow, n, m, d, out_dtype):
    row_bytes = 2 * (m * d * zrow.dtype.itemsize + d * jnp.dtype(out_dtype).itemsize)
    tn = _node_tile(n, row_bytes, _SLAB_BUDGET)
    out = pl.pallas_call(
        functools.partial(_mix_kernel, num_meta=m, feat_dim=d),
        out_shape=jax.ShapeDtypeStruct((n, d), out_dtype),
        grid=(_ceil_div(n, tn),),
        in_specs=[
            pl.BlockSpec(memory_space=pltpu.MemorySpace.SMEM),   # beta (1, M) scalars
            pl.BlockSpec((tn, m * d), lambda i: (i, 0)),         # lane-dense z slab
        ],
        out_specs=pl.BlockSpec((tn, d), lambda i: (i, 0)),
        compiler_params=pltpu.CompilerParams(
            dimension_semantics=("parallel",),
            vmem_limit_bytes=_VMEM_LIMIT),
    )(beta_row, zrow)
    return out


# --------------------------------------------------------------------------- #
# Public wrapper                                                               #
# --------------------------------------------------------------------------- #
def semantic_attention(z, w1, b1, q, *, force_two_pass=False):
    """Eval-mode SemanticAttention forward.

    z  : (N, M, D)  stacked per-metapath node embeddings
    w1 : (D, H)     first Linear weight, pre-transposed (y = x @ w1 + b1)
    b1 : (1, H)     first Linear bias
    q  : (1, H)     second Linear weight (out_features=1, no bias)
    returns (out (N, D), beta (M, 1))
    """
    n, m, d = z.shape
    hdim = w1.shape[1]
    zrow = z.reshape(n, m * d)          # layout-preserving, lane-dense view

    itemsize = z.dtype.itemsize
    fused_bytes = (n * m * d) * itemsize              # resident z slab
    fused_bytes += n * d * itemsize                   # output
    fused_bytes += n * (hdim + 2 * d) * 4             # h + acc temporaries
    fused_bytes += (d * hdim + 2 * hdim) * 4          # weights

    if (not force_two_pass) and fused_bytes <= _FUSED_BUDGET:
        out, beta_row = _semantic_attention_fused(zrow, w1, b1, q, n, m, d)
        return out, beta_row.reshape(m, 1)

    beta_vec = _scores_two_pass(zrow, w1, b1, q, n, m, d)         # (M,)
    out = _mix_two_pass(beta_vec.reshape(1, m), zrow, n, m, d, z.dtype)
    return out, beta_vec.reshape(m, 1)


# --------------------------------------------------------------------------- #
# Plain-JAX reference matching the torch forward (eval mode)                   #
# --------------------------------------------------------------------------- #
def semantic_attention_ref(z, w1, b1, q):
    h = jnp.tanh(jnp.einsum('nmd,dh->nmh', z, w1) + b1[0])       # (N, M, H)
    w = jnp.einsum('nmh,h->nm', h, q[0])[..., None]              # (N, M, 1)
    wm = jnp.mean(w, axis=0)                                     # (M, 1)
    beta = jax.nn.softmax(wm, axis=0)                            # (M, 1)
    out = jnp.sum(beta[None] * z, axis=1)                        # (N, D)
    return out, beta


if __name__ == "__main__":
    key = jax.random.PRNGKey(0)
    k_z, k_w1, k_b1, k_q = jax.random.split(key, 4)

    # nodes, metapaths, in_size, hidden_size (module default hidden_size=128)
    N, M, D, H = 256, 4, 128, 128

    z = jax.random.normal(k_z, (N, M, D), dtype=jnp.float32)
    lim1 = (6.0 / (D + H)) ** 0.5
    w1 = jax.random.uniform(k_w1, (D, H), jnp.float32, -lim1, lim1)
    b1 = jax.random.uniform(k_b1, (1, H), jnp.float32, -0.1, 0.1)
    lim2 = (6.0 / (H + 1)) ** 0.5
    q = jax.random.uniform(k_q, (1, H), jnp.float32, -lim2, lim2)

    ref_out, ref_beta = semantic_attention_ref(z, w1, b1, q)

    # Fast fused path (z fits VMEM budget)
    out, beta = semantic_attention(z, w1, b1, q)
    out = jax.block_until_ready(out)
    beta = jax.block_until_ready(beta)
    assert out.shape == (N, D) and beta.shape == (M, 1)
    assert jnp.allclose(beta, ref_beta, atol=2e-3, rtol=2e-3), "fused beta mismatch"
    assert jnp.allclose(out, ref_out, atol=2e-3, rtol=2e-3), "fused output mismatch"

    # Streaming two-pass path (exercised explicitly for coverage)
    out2, beta2 = semantic_attention(z, w1, b1, q, force_two_pass=True)
    out2 = jax.block_until_ready(out2)
    beta2 = jax.block_until_ready(beta2)
    assert jnp.allclose(beta2, ref_beta, atol=2e-3, rtol=2e-3), "streaming beta mismatch"
    assert jnp.allclose(out2, ref_out, atol=2e-3, rtol=2e-3), "streaming output mismatch"

    print("KERNEL_OK")
</pallas_src>

<mosaic_0001>
module attributes {stable_mosaic.version = 11 : i64} {
  func.func @_fused_kernel(%arg0: memref<256x512xf32, #tpu.memory_space<vmem>>, %arg1: memref<128x128xf32, #tpu.memory_space<vmem>>, %arg2: memref<1x128xf32, #tpu.memory_space<vmem>>, %arg3: memref<1x128xf32, #tpu.memory_space<vmem>>, %arg4: memref<256x128xf32, #tpu.memory_space<vmem>>, %arg5: memref<1x4xf32, #tpu.memory_space<vmem>>) attributes {dimension_semantics = [], scalar_prefetch = 0 : i64, scratch_operands = 0 : i64, tpu.core_type = #tpu.core_type<tc>} {
    %c0 = arith.constant 0 : index
    %c0_0 = arith.constant 0 : index
    %0 = vector.load %arg1[%c0, %c0_0] : memref<128x128xf32, #tpu.memory_space<vmem>>, vector<128x128xf32>
    %c0_1 = arith.constant 0 : index
    %c0_2 = arith.constant 0 : index
    %1 = vector.load %arg2[%c0_1, %c0_2] : memref<1x128xf32, #tpu.memory_space<vmem>>, vector<1x128xf32>
    %c0_3 = arith.constant 0 : index
    %c0_4 = arith.constant 0 : index
    %2 = vector.load %arg3[%c0_3, %c0_4] : memref<1x128xf32, #tpu.memory_space<vmem>>, vector<1x128xf32>
    %3 = tpu.iota {dimensions = array<i32: 1>} : vector<1x4xi32>
    %cst = arith.constant 0.000000e+00 : f32
    %4 = vector.broadcast %cst : f32 to vector<1x4xf32>
    %c0_5 = arith.constant 0 : index
    %c0_6 = arith.constant 0 : index
    %5 = vector.load %arg0[%c0_5, %c0_6] : memref<256x512xf32, #tpu.memory_space<vmem>>, vector<256x128xf32>
    %cst_7 = arith.constant dense<0.000000e+00> : vector<256x128xf32>
    %6 = tpu.matmul %5, %0, %cst_7 {dimension_numbers = #tpu.dot_dimension_numbers<[1], [0], [0], [1], [0, 0, 1, 1], [], []>} : vector<256x128xf32>, vector<128x128xf32>, vector<256x128xf32> -> vector<256x128xf32>
    %7 = vector.broadcast %1 : vector<1x128xf32> to vector<256x128xf32>
    %8 = arith.addf %6, %7 : vector<256x128xf32>
    %9 = math.tanh %8 : vector<256x128xf32>
    %cst_8 = arith.constant dense<0.000000e+00> : vector<128xf32>
    %10 = vector.multi_reduction <add>, %9, %cst_8 [0] : vector<256x128xf32> to vector<128xf32>
    %11 = vector.shape_cast %10 : vector<128xf32> to vector<1x128xf32>
    %12 = arith.mulf %11, %2 : vector<1x128xf32>
    %cst_9 = arith.constant dense<0.000000e+00> : vector<1xf32>
    %13 = vector.multi_reduction <add>, %12, %cst_9 [1] : vector<1x128xf32> to vector<1xf32>
    %14 = vector.shape_cast %13 : vector<1xf32> to vector<1x1xf32>
    %c0_i32 = arith.constant 0 : i32
    %15 = vector.broadcast %c0_i32 : i32 to vector<1x4xi32>
    %16 = arith.cmpi eq, %3, %15 : vector<1x4xi32>
    %17 = vector.shape_cast %14 : vector<1x1xf32> to vector<1x1xf32>
    %18 = vector.broadcast %17 : vector<1x1xf32> to vector<1x4xf32>
    %19 = arith.select %16, %18, %4 : vector<1x4xi1>, vector<1x4xf32>
    %c0_10 = arith.constant 0 : index
    %c128 = arith.constant 128 : index
    %20 = vector.load %arg0[%c0_10, %c128] : memref<256x512xf32, #tpu.memory_space<vmem>>, vector<256x128xf32>
    %cst_11 = arith.constant dense<0.000000e+00> : vector<256x128xf32>
    %21 = tpu.matmul %20, %0, %cst_11 {dimension_numbers = #tpu.dot_dimension_numbers<[1], [0], [0], [1], [0, 0, 1, 1], [], []>} : vector<256x128xf32>, vector<128x128xf32>, vector<256x128xf32> -> vector<256x128xf32>
    %22 = vector.broadcast %1 : vector<1x128xf32> to vector<256x128xf32>
    %23 = arith.addf %21, %22 : vector<256x128xf32>
    %24 = math.tanh %23 : vector<256x128xf32>
    %cst_12 = arith.constant dense<0.000000e+00> : vector<128xf32>
    %25 = vector.multi_reduction <add>, %24, %cst_12 [0] : vector<256x128xf32> to vector<128xf32>
    %26 = vector.shape_cast %25 : vector<128xf32> to vector<1x128xf32>
    %27 = arith.mulf %26, %2 : vector<1x128xf32>
    %cst_13 = arith.constant dense<0.000000e+00> : vector<1xf32>
    %28 = vector.multi_reduction <add>, %27, %cst_13 [1] : vector<1x128xf32> to vector<1xf32>
    %29 = vector.shape_cast %28 : vector<1xf32> to vector<1x1xf32>
    %c1_i32 = arith.constant 1 : i32
    %30 = vector.broadcast %c1_i32 : i32 to vector<1x4xi32>
    %31 = arith.cmpi eq, %3, %30 : vector<1x4xi32>
    %32 = vector.shape_cast %29 : vector<1x1xf32> to vector<1x1xf32>
    %33 = vector.broadcast %32 : vector<1x1xf32> to vector<1x4xf32>
    %34 = arith.select %31, %33, %19 : vector<1x4xi1>, vector<1x4xf32>
    %c0_14 = arith.constant 0 : index
    %c256 = arith.constant 256 : index
    %35 = vector.load %arg0[%c0_14, %c256] : memref<256x512xf32, #tpu.memory_space<vmem>>, vector<256x128xf32>
    %cst_15 = arith.constant dense<0.000000e+00> : vector<256x128xf32>
    %36 = tpu.matmul %35, %0, %cst_15 {dimension_numbers = #tpu.dot_dimension_numbers<[1], [0], [0], [1], [0, 0, 1, 1], [], []>} : vector<256x128xf32>, vector<128x128xf32>, vector<256x128xf32> -> vector<256x128xf32>
    %37 = vector.broadcast %1 : vector<1x128xf32> to vector<256x128xf32>
    %38 = arith.addf %36, %37 : vector<256x128xf32>
    %39 = math.tanh %38 : vector<256x128xf32>
    %cst_16 = arith.constant dense<0.000000e+00> : vector<128xf32>
    %40 = vector.multi_reduction <add>, %39, %cst_16 [0] : vector<256x128xf32> to vector<128xf32>
    %41 = vector.shape_cast %40 : vector<128xf32> to vector<1x128xf32>
    %42 = arith.mulf %41, %2 : vector<1x128xf32>
    %cst_17 = arith.constant dense<0.000000e+00> : vector<1xf32>
    %43 = vector.multi_reduction <add>, %42, %cst_17 [1] : vector<1x128xf32> to vector<1xf32>
    %44 = vector.shape_cast %43 : vector<1xf32> to vector<1x1xf32>
    %c2_i32 = arith.constant 2 : i32
    %45 = vector.broadcast %c2_i32 : i32 to vector<1x4xi32>
    %46 = arith.cmpi eq, %3, %45 : vector<1x4xi32>
    %47 = vector.shape_cast %44 : vector<1x1xf32> to vector<1x1xf32>
    %48 = vector.broadcast %47 : vector<1x1xf32> to vector<1x4xf32>
    %49 = arith.select %46, %48, %34 : vector<1x4xi1>, vector<1x4xf32>
    %c0_18 = arith.constant 0 : index
    %c384 = arith.constant 384 : index
    %50 = vector.load %arg0[%c0_18, %c384] : memref<256x512xf32, #tpu.memory_space<vmem>>, vector<256x128xf32>
    %cst_19 = arith.constant dense<0.000000e+00> : vector<256x128xf32>
    %51 = tpu.matmul %50, %0, %cst_19 {dimension_numbers = #tpu.dot_dimension_numbers<[1], [0], [0], [1], [0, 0, 1, 1], [], []>} : vector<256x128xf32>, vector<128x128xf32>, vector<256x128xf32> -> vector<256x128xf32>
    %52 = vector.broadcast %1 : vector<1x128xf32> to vector<256x128xf32>
    %53 = arith.addf %51, %52 : vector<256x128xf32>
    %54 = math.tanh %53 : vector<256x128xf32>
    %cst_20 = arith.constant dense<0.000000e+00> : vector<128xf32>
    %55 = vector.multi_reduction <add>, %54, %cst_20 [0] : vector<256x128xf32> to vector<128xf32>
    %56 = vector.shape_cast %55 : vector<128xf32> to vector<1x128xf32>
    %57 = arith.mulf %56, %2 : vector<1x128xf32>
    %cst_21 = arith.constant dense<0.000000e+00> : vector<1xf32>
    %58 = vector.multi_reduction <add>, %57, %cst_21 [1] : vector<1x128xf32> to vector<1xf32>
    %59 = vector.shape_cast %58 : vector<1xf32> to vector<1x1xf32>
    %c3_i32 = arith.constant 3 : i32
    %60 = vector.broadcast %c3_i32 : i32 to vector<1x4xi32>
    %61 = arith.cmpi eq, %3, %60 : vector<1x4xi32>
    %62 = vector.shape_cast %59 : vector<1x1xf32> to vector<1x1xf32>
    %63 = vector.broadcast %62 : vector<1x1xf32> to vector<1x4xf32>
    %64 = arith.select %61, %63, %49 : vector<1x4xi1>, vector<1x4xf32>
    %cst_22 = arith.constant 3.906250e-03 : f32
    %65 = vector.broadcast %cst_22 : f32 to vector<1x4xf32>
    %66 = arith.mulf %64, %65 : vector<1x4xf32>
    %cst_23 = arith.constant dense<0xFF800000> : vector<1xf32>
    %67 = vector.multi_reduction <maximumf>, %66, %cst_23 [1] : vector<1x4xf32> to vector<1xf32>
    %68 = vector.shape_cast %67 : vector<1xf32> to vector<1x1xf32>
    %69 = vector.broadcast %68 : vector<1x1xf32> to vector<1x4xf32>
    %70 = arith.subf %66, %69 : vector<1x4xf32>
    %71 = math.exp %70 : vector<1x4xf32>
    %cst_24 = arith.constant dense<0.000000e+00> : vector<1xf32>
    %72 = vector.multi_reduction <add>, %71, %cst_24 [1] : vector<1x4xf32> to vector<1xf32>
    %73 = vector.shape_cast %72 : vector<1xf32> to vector<1x1xf32>
    %74 = vector.broadcast %73 : vector<1x1xf32> to vector<1x4xf32>
    %75 = arith.divf %71, %74 : vector<1x4xf32>
    %c0_25 = arith.constant 0 : index
    %c0_26 = arith.constant 0 : index
    %76 = vector.load %arg5[%c0_25, %c0_26] : memref<1x4xf32, #tpu.memory_space<vmem>>, vector<1x4xf32>
    tpu.vector_store %arg5[%c0_25, %c0_26], %75 {strides = array<i32>} : memref<1x4xf32, #tpu.memory_space<vmem>>, vector<1x4xf32>,
    %77 = vector.extract_strided_slice %75 {offsets = [0, 0], sizes = [1, 1], strides = [1, 1]} : vector<1x4xf32> to vector<1x1xf32>
    %c0_27 = arith.constant 0 : index
    %c0_28 = arith.constant 0 : index
    %78 = vector.load %arg0[%c0_27, %c0_28] : memref<256x512xf32, #tpu.memory_space<vmem>>, vector<256x128xf32>
    %79 = vector.broadcast %77 : vector<1x1xf32> to vector<256x128xf32>
    %80 = arith.mulf %79, %78 : vector<256x128xf32>
    %81 = vector.extract_strided_slice %75 {offsets = [0, 1], sizes = [1, 1], strides = [1, 1]} : vector<1x4xf32> to vector<1x1xf32>
    %c0_29 = arith.constant 0 : index
    %c128_30 = arith.constant 128 : index
    %82 = vector.load %arg0[%c0_29, %c128_30] : memref<256x512xf32, #tpu.memory_space<vmem>>, vector<256x128xf32>
    %83 = vector.broadcast %81 : vector<1x1xf32> to vector<256x128xf32>
    %84 = arith.mulf %83, %82 : vector<256x128xf32>
    %85 = arith.addf %80, %84 : vector<256x128xf32>
    %86 = vector.extract_strided_slice %75 {offsets = [0, 2], sizes = [1, 1], strides = [1, 1]} : vector<1x4xf32> to vector<1x1xf32>
    %c0_31 = arith.constant 0 : index
    %c256_32 = arith.constant 256 : index
    %87 = vector.load %arg0[%c0_31, %c256_32] : memref<256x512xf32, #tpu.memory_space<vmem>>, vector<256x128xf32>
    %88 = vector.broadcast %86 : vector<1x1xf32> to vector<256x128xf32>
    %89 = arith.mulf %88, %87 : vector<256x128xf32>
    %90 = arith.addf %85, %89 : vector<256x128xf32>
    %91 = vector.extract_strided_slice %75 {offsets = [0, 3], sizes = [1, 1], strides = [1, 1]} : vector<1x4xf32> to vector<1x1xf32>
    %c0_33 = arith.constant 0 : index
    %c384_34 = arith.constant 384 : index
    %92 = vector.load %arg0[%c0_33, %c384_34] : memref<256x512xf32, #tpu.memory_space<vmem>>, vector<256x128xf32>
    %93 = vector.broadcast %91 : vector<1x1xf32> to vector<256x128xf32>
    %94 = arith.mulf %93, %92 : vector<256x128xf32>
    %95 = arith.addf %90, %94 : vector<256x128xf32>
    %c0_35 = arith.constant 0 : index
    %c0_36 = arith.constant 0 : index
    %96 = vector.load %arg4[%c0_35, %c0_36] : memref<256x128xf32, #tpu.memory_space<vmem>>, vector<256x128xf32>
    tpu.vector_store %arg4[%c0_35, %c0_36], %95 {strides = array<i32>} : memref<256x128xf32, #tpu.memory_space<vmem>>, vector<256x128xf32>,
    return
  }
}

</mosaic_0001>

<bundles_post_ra>
// kernel: tpu_custom_call.1
= control target key start
LH: loop header
LB: loop body
LE: loop exit
PB: predicated region body
PF: predicated region fallthrough
CT: control target
= control target key end

     0   :  { %11 = vsyncpa [#allocation3], 0  ;;  %s3586_s0 = inlined_call_operand.hbm [shape: f32[256,512], index: 0, kind: input, shape index: {}]   ;;  %s3587_s1 = inlined_call_operand.hbm [shape: f32[128,128], index: 1, kind: input, shape index: {}]   ;;  %s3588_s2 = inlined_call_operand.vmem [shape: f32[1,128], index: 2, kind: input, shape index: {}]   ;;  %s3589_s3 = inlined_call_operand.vmem [shape: f32[1,128], index: 3, kind: input, shape index: {}]   ;;  %s3590_s4 = inlined_call_operand.hbm [shape: f32[256,128], index: 4, kind: output, shape index: {0}]   ;;  %s3591_s5 = inlined_call_operand.hbm [shape: f32[1,4], index: 5, kind: output, shape index: {1}]  }
   0x1   :  { %12 = vsyncpa [#allocation6], 0 }
   0x2   :  { %13 = vsyncpa [#allocation4], 0 }
   0x3   :  { %14 = vsyncpa [#allocation9], 0  ;;  %s2870_s18 = smov [#allocation2]   ;;  %s2774_s22 = scalar_lea.hbm %s3586_s0, 16384 }
   0x4   :  { %s20_s19 = sshll.u32 %s2870_s18, 4  ;;  %p2775_p0 = scmp.ne.s32.totalorder %s3586_s0, %s2774_s22  ;;  %s21_s19 = int_to_ptr.vmem [resolvable:$true] %s20_s19 }
   0x5   :  { %p2778_p1 = scmp.lt.u32.totalorder %s2774_s22, %s3586_s0 }
   0x7   :  { %p2780_p2 = pnand %p2778_p1, %p2775_p0 }
   0x9   :  { %2783 = shalt.err (!%p2780_p2)
}
   0xa   :  { %s2784_s27 = scalar_lea.vmem %s21_s19, 16384  ;;  %p2789_p4 = scmp.lt.s32.totalorder %s21_s19, %s21_s19 }
   0xb   :  { %p2785_p3 = scmp.ne.s32.totalorder %s21_s19, %s2784_s27  ;;  %p2790_p5 = scmp.lt.s32.totalorder %s2784_s27, %s2784_s27 }
   0xd   :  { %p2791_p6 = por %p2790_p5, %p2789_p4 }
   0xf   :  { %p2792_p7 = pnand %p2791_p6, %p2785_p3 }
  0x11   :  { %2795 = shalt.err (!%p2792_p7)
}
  0x12   :  { %s2871_s28 = smov 512   ;;  %s2872_s29 = smov 32  }
  0x13   :  { %26 = dma.hbm_to_vmem [thread:$0]  %s3586_s0, 16384, %s21_s19, [#allocation3], %s2871_s28, %s2871_s28, %s2872_s29  }
  0x14   :  { %s2873_s7 = smov [#allocation5]   ;;  %s2796_s11 = scalar_lea.hbm %s3587_s1, 2048 }
  0x15   :  { %s32_s8 = sshll.u32 %s2873_s7, 4  ;;  %p2797_p8 = scmp.ne.s32.totalorder %s3587_s1, %s2796_s11  ;;  %s33_s8 = int_to_ptr.vmem [resolvable:$true] %s32_s8 }
  0x16   :  { %p2800_p9 = scmp.lt.u32.totalorder %s2796_s11, %s3587_s1 }
  0x18   :  { %p2802_p10 = pnand %p2800_p9, %p2797_p8 }
  0x1a   :  { %2805 = shalt.err (!%p2802_p10)
}
  0x1b   :  { %s2806_s16 = scalar_lea.vmem %s33_s8, 2048  ;;  %p2811_p12 = scmp.lt.s32.totalorder %s33_s8, %s33_s8 }
  0x1c   :  { %p2807_p11 = scmp.ne.s32.totalorder %s33_s8, %s2806_s16  ;;  %p2812_p13 = scmp.lt.s32.totalorder %s2806_s16, %s2806_s16 }
  0x1e   :  { %p2813_p0 = por %p2812_p13, %p2811_p12 }
  0x20   :  { %p2814_p1 = pnand %p2813_p0, %p2807_p11 }
  0x22   :  { %2817 = shalt.err (!%p2814_p1)
}
  0x23   :  { %s2874_s0 = smov 128   ;;  %s2875_s17 = smov 8  }
  0x24   :  { %38 = dma.hbm_to_vmem [thread:$0]  %s3587_s1, 2048, %s33_s8, [#allocation6], %s2874_s0, %s2874_s0, %s2875_s17  }
  0x25   :  { %2862 = dma.done.wait [#allocation3], 16384  }
  0x26   :  { %2863 = vsyncadd [#allocation3], 4294950912 }
  0x27   :  { %2864 = dma.done.wait [#allocation6], 2048  }
  0x28   :  { %2865 = vsyncadd [#allocation6], 4294965248  ;;  %v49_v0 = vld [vmem:[#allocation5] sm:$0xff]  ;;  %v50_v1 = vld [vmem:[#allocation5 + $0x8] sm:$0xff]  ;;  %vm402_vm0 = vcmask 1040384   ;;  %vm1405_vm5 = vcmask 24576  }
  0x29   :  { %v51_v2 = vld [vmem:[#allocation5 + $0x10] sm:$0xff]  ;;  %v2938_v3 = vpack.c.bf16 %v50_v1, %v49_v0  ;;  %v52_v4 = vld [vmem:[#allocation5 + $0x18] sm:$0xff]  ;;  %v53_v6 = vld [vmem:[#allocation5 + $0x20] sm:$0xff]  ;;  %s2877_s24 = smov 127   ;;  %s2878_s25 = smov 125  }
  0x2a   :  { %v2940_v5 = vpack.c.bf16 %v52_v4, %v51_v2  ;;  %v54_v7 = vld [vmem:[#allocation5 + $0x28] sm:$0xff]  ;;  %v69_v9 = vld [vmem:[#allocation2] sm:$0xff]  ;;  %v55_v11 = vld [vmem:[#allocation5 + $0x30] sm:$0xff]  ;;  %s2879_s26 = smov [#allocation8]  }
  0x2b   :  { %2367 = vmatprep.subr.bf16.mxu0 %v2938_v3  ;;  %2399 = vmatprep.subr.bf16.mxu1 %v2938_v3  ;;  %v2948_v8 = vpack.c.bf16 %v54_v7, %v53_v6  ;;  %v408_v10 = vld [vmem:[#allocation2 + $0x8] sm:$0xff]  ;;  %v56_v12 = vld [vmem:[#allocation5 + $0x38] sm:$0xff]  ;;  %v57_v14 = vld [vmem:[#allocation5 + $0x40] sm:$0xff]  ;;  %s1839_s27 = sshll.u32 %s2879_s26, 4  ;;  %s1840_s27 = int_to_ptr.vmem [resolvable:$true] %s1839_s27 }
  0x2c   :  { %2369 = vmatpush3.bf16.msra.mxu0 %v2938_v3  ;;  %2401 = vmatpush3.bf16.msra.mxu1 %v2938_v3  ;;  %v2954_v13 = vpack.c.bf16 %v56_v12, %v55_v11  ;;  %v58_v15 = vld [vmem:[#allocation5 + $0x48] sm:$0xff]  ;;  %v59_v17 = vld [vmem:[#allocation5 + $0x50] sm:$0xff]  ;;  %v60_v18 = vld [vmem:[#allocation5 + $0x58] sm:$0xff]  ;;  %s2818_s28 = scalar_lea.vmem %s1840_s27, 16  ;;  %s2822_s29 = scalar_lea.vmem %s1840_s27, 32 }
  0x2d   :  { %2371 = vmatprep.subr.bf16.mxu0 %v2940_v5  ;;  %2403 = vmatprep.subr.bf16.mxu1 %v2940_v5  ;;  %v2960_v16 = vpack.c.bf16 %v58_v15, %v57_v14  ;;  %v2966_v19 = vpack.c.bf16 %v60_v18, %v59_v17  ;;  %v61_v20 = vld [vmem:[#allocation5 + $0x60] sm:$0xff]  ;;  %v62_v21 = vld [vmem:[#allocation5 + $0x68] sm:$0xff]  ;;  %v63_v23 = vld [vmem:[#allocation5 + $0x70] sm:$0xff]  ;;  %p2819_p2 = scmp.ne.s32.totalorder %s1840_s27, %s2818_s28  ;;  %p2823_p3 = scmp.lt.s32.totalorder %s1840_s27, %s1840_s27 }
  0x2e   :  { %2078 = vmatprep.mubr.f32.mxu0 %v69_v9  ;;  %2158 = vmatprep.mubr.f32.mxu1 %v408_v10  ;;  %v2972_v22 = vpack.c.bf16 %v62_v21, %v61_v20  ;;  %v64_v24 = vld [vmem:[#allocation5 + $0x78] sm:$0xff]  ;;  %v70_v26 = vld [vmem:[#allocation2 + $0x20] sm:$0xff]  ;;  %v409_v27 = vld [vmem:[#allocation2 + $0x28] sm:$0xff]  ;;  %p2824_p4 = scmp.lt.s32.totalorder %s2822_s29, %s2818_s28 }
  0x2f   :  { %v2978_v25 = vpack.c.bf16 %v64_v24, %v63_v23  ;;  %v71_v28 = vld [vmem:[#allocation2 + $0x40] sm:$0xff]  ;;  %v410_v29 = vld [vmem:[#allocation2 + $0x48] sm:$0xff]  ;;  %v740_v24 = vld [vmem:[#allocation2 + $0x10] sm:$0xff] }
  0x30   :  { %2373 = vmatpush3.bf16.msra.mxu0 %v2940_v5  ;;  %2405 = vmatpush3.bf16.msra.mxu1 %v2940_v5  ;;  %v72_v30 = vld [vmem:[#allocation2 + $0x60] sm:$0xff]  ;;  %v411_v31 = vld [vmem:[#allocation2 + $0x68] sm:$0xff]  ;;  %p2825_p5 = por %p2824_p4, %p2823_p3 }
  0x31   :  { %2375 = vmatprep.subr.bf16.mxu0 %v2948_v8  ;;  %2407 = vmatprep.subr.bf16.mxu1 %v2948_v8  ;;  %v73_v32 = vld [vmem:[#allocation2 + $0x80] sm:$0xff]  ;;  %v412_v33 = vld [vmem:[#allocation2 + $0x88] sm:$0xff] }
  0x32   :  { %v74_v34 = vld [vmem:[#allocation2 + $0xa0] sm:$0xff]  ;;  %v413_v35 = vld [vmem:[#allocation2 + $0xa8] sm:$0xff]  ;;  %p2826_p6 = pnand %p2825_p5, %p2819_p2 }
  0x33   :  { %v75_v36 = vld [vmem:[#allocation2 + $0xc0] sm:$0xff]  ;;  %v414_v37 = vld [vmem:[#allocation2 + $0xc8] sm:$0xff] }
  0x34   :  { %2377 = vmatpush3.bf16.msra.mxu0 %v2948_v8  ;;  %2409 = vmatpush3.bf16.msra.mxu1 %v2948_v8  ;;  %v76_v38 = vld [vmem:[#allocation2 + $0xe0] sm:$0xff]  ;;  %v415_v39 = vld [vmem:[#allocation2 + $0xe8] sm:$0xff] }
  0x35   :  { %2379 = vmatprep.subr.bf16.mxu0 %v2954_v13  ;;  %2411 = vmatprep.subr.bf16.mxu1 %v2954_v13  ;;  %v77_v40 = vld [vmem:[#allocation2 + $0x100] sm:$0xff]  ;;  %v416_v41 = vld [vmem:[#allocation2 + $0x108] sm:$0xff] }
  0x36   :  { %v78_v42 = vld [vmem:[#allocation2 + $0x120] sm:$0xff]  ;;  %v417_v43 = vld [vmem:[#allocation2 + $0x128] sm:$0xff] }
  0x37   :  { %v79_v44 = vld [vmem:[#allocation2 + $0x140] sm:$0xff]  ;;  %v418_v45 = vld [vmem:[#allocation2 + $0x148] sm:$0xff] }
  0x38   :  { %2381 = vmatpush3.bf16.msra.mxu0 %v2954_v13  ;;  %2413 = vmatpush3.bf16.msra.mxu1 %v2954_v13  ;;  %v80_v46 = vld [vmem:[#allocation2 + $0x160] sm:$0xff]  ;;  %v419_v47 = vld [vmem:[#allocation2 + $0x168] sm:$0xff] }
  0x39   :  { %2383 = vmatprep.subr.bf16.mxu0 %v2960_v16  ;;  %2415 = vmatprep.subr.bf16.mxu1 %v2960_v16  ;;  %v81_v48 = vld [vmem:[#allocation2 + $0x180] sm:$0xff]  ;;  %v420_v49 = vld [vmem:[#allocation2 + $0x188] sm:$0xff] }
  0x3a   :  { %v82_v50 = vld [vmem:[#allocation2 + $0x1a0] sm:$0xff]  ;;  %v421_v51 = vld [vmem:[#allocation2 + $0x1a8] sm:$0xff] }
  0x3b   :  { %v83_v52 = vld [vmem:[#allocation2 + $0x1c0] sm:$0xff]  ;;  %v422_v53 = vld [vmem:[#allocation2 + $0x1c8] sm:$0xff] }
  0x3c   :  { %2385 = vmatpush3.bf16.msra.mxu0 %v2960_v16  ;;  %2417 = vmatpush3.bf16.msra.mxu1 %v2960_v16  ;;  %v84_v54 = vld [vmem:[#allocation2 + $0x1e0] sm:$0xff]  ;;  %v423_v55 = vld [vmem:[#allocation2 + $0x1e8] sm:$0xff] }
  0x3d   :  { %2387 = vmatprep.subr.bf16.mxu0 %v2966_v19  ;;  %2419 = vmatprep.subr.bf16.mxu1 %v2966_v19  ;;  %v85_v56 = vld [vmem:[#allocation2 + $0x200] sm:$0xff]  ;;  %v424_v57 = vld [vmem:[#allocation2 + $0x208] sm:$0xff] }
  0x3e   :  { %v86_v58 = vld [vmem:[#allocation2 + $0x220] sm:$0xff]  ;;  %v425_v59 = vld [vmem:[#allocation2 + $0x228] sm:$0xff] }
  0x3f   :  { %v87_v60 = vld [vmem:[#allocation2 + $0x240] sm:$0xff]  ;;  %v426_v61 = vld [vmem:[#allocation2 + $0x248] sm:$0xff] }
  0x40   :  { %2389 = vmatpush3.bf16.msra.mxu0 %v2966_v19  ;;  %2421 = vmatpush3.bf16.msra.mxu1 %v2966_v19  ;;  %v88_v62 = vld [vmem:[#allocation2 + $0x260] sm:$0xff]  ;;  %v427_v63 = vld [vmem:[#allocation2 + $0x268] sm:$0xff] }
  0x41   :  { %2391 = vmatprep.subr.bf16.mxu0 %v2972_v22  ;;  %2423 = vmatprep.subr.bf16.mxu1 %v2972_v22  ;;  %v89_v0 = vld [vmem:[#allocation2 + $0x280] sm:$0xff]  ;;  %v428_v1 = vld [vmem:[#allocation2 + $0x288] sm:$0xff] }
  0x42   :  { %v90_v2 = vld [vmem:[#allocation2 + $0x2a0] sm:$0xff]  ;;  %v431_v7 = vld [vmem:[#allocation2 + $0x2e8] sm:$0xff] }
  0x43   :  { %v91_v4 = vld [vmem:[#allocation2 + $0x2c0] sm:$0xff]  ;;  %v432_v9 = vld [vmem:[#allocation2 + $0x308] sm:$0xff] }
  0x44   :  { %2393 = vmatpush3.bf16.msra.mxu0 %v2972_v22  ;;  %2425 = vmatpush3.bf16.msra.mxu1 %v2972_v22  ;;  %v92_v6 = vld [vmem:[#allocation2 + $0x2e0] sm:$0xff]  ;;  %v433_v11 = vld [vmem:[#allocation2 + $0x328] sm:$0xff] }
  0x45   :  { %2395 = vmatprep.subr.bf16.mxu0 %v2978_v25  ;;  %2427 = vmatprep.subr.bf16.mxu1 %v2978_v25  ;;  %v94_v10 = vld [vmem:[#allocation2 + $0x320] sm:$0xff]  ;;  %v435_v15 = vld [vmem:[#allocation2 + $0x368] sm:$0xff] }
  0x46   :  { %v95_v12 = vld [vmem:[#allocation2 + $0x340] sm:$0xff]  ;;  %v436_v17 = vld [vmem:[#allocation2 + $0x388] sm:$0xff] }
  0x47   :  { %v96_v14 = vld [vmem:[#allocation2 + $0x360] sm:$0xff]  ;;  %v438_v21 = vld [vmem:[#allocation2 + $0x3c8] sm:$0xff] }
  0x48   :  { %2397 = vmatpush3.bf16.msra.mxu0 %v2978_v25  ;;  %2429 = vmatpush3.bf16.msra.mxu1 %v2978_v25  ;;  %v98_v18 = vld [vmem:[#allocation2 + $0x3a0] sm:$0xff]  ;;  %v439_v23 = vld [vmem:[#allocation2 + $0x3e8] sm:$0xff] }
  0x49   :  { %2431 = vmatprep.subr.bf16.mxu0 %v2938_v3  ;;  %2463 = vmatprep.subr.bf16.mxu1 %v2938_v3  ;;  %v99_v20 = vld [vmem:[#allocation2 + $0x3c0] sm:$0xff] }
  0x4b   :  { %2079 = vmatmul.mubr.f32.vlgmr.msra.gmra.mrb[0].mxu0 %v70_v26  ;;  %2159 = vmatmul.mubr.f32.vlgmr.msra.gmra.mrb[0].mxu1 %v409_v27  ;;  %v741_v26 = vld [vmem:[#allocation2 + $0x30] sm:$0xff]  ;;  %v1073_v27 = vld [vmem:[#allocation2 + $0x38] sm:$0xff] }
  0x4c   :  { %2433 = vmatpush3.bf16.msra.mxu0 %v2938_v3  ;;  %2081 = vmatprep.mubr.f32.mxu0 %v71_v28  ;;  %v742_v28 = vld [vmem:[#allocation2 + $0x50] sm:$0xff] }
  0x4d   :  { %2161 = vmatprep.mubr.f32.mxu1 %v410_v29  ;;  %2465 = vmatpush3.bf16.msra.mxu1 %v2938_v3  ;;  %v429_v3 = vld [vmem:[#allocation2 + $0x2a8] sm:$0xff]  ;;  %v1074_v29 = vld [vmem:[#allocation2 + $0x58] sm:$0xff] }
  0x4e   :  { %2435 = vmatprep.subr.bf16.mxu0 %v2940_v5  ;;  %2467 = vmatprep.subr.bf16.mxu1 %v2940_v5 }
  0x4f   :  { %2082 = vmatmul.mubr.f32.gmra.mrb[2].mxu0 %v72_v30  ;;  %2162 = vmatmul.mubr.f32.gmra.mrb[2].mxu1 %v411_v31  ;;  %v743_v30 = vld [vmem:[#allocation2 + $0x70] sm:$0xff]  ;;  %v1075_v31 = vld [vmem:[#allocation2 + $0x78] sm:$0xff] }
  0x50   :  { %2084 = vmatprep.mubr.f32.mxu0 %v73_v32  ;;  %2164 = vmatprep.mubr.f32.mxu1 %v412_v33  ;;  %v744_v32 = vld [vmem:[#allocation2 + $0x90] sm:$0xff]  ;;  %v1076_v33 = vld [vmem:[#allocation2 + $0x98] sm:$0xff] }
  0x51   :  { %2437 = vmatpush3.bf16.msra.mxu0 %v2940_v5  ;;  %2469 = vmatpush3.bf16.msra.mxu1 %v2940_v5  ;;  %v430_v5 = vld [vmem:[#allocation2 + $0x2c8] sm:$0xff] }
  0x52   :  { %2439 = vmatprep.subr.bf16.mxu0 %v2948_v8  ;;  %2471 = vmatprep.subr.bf16.mxu1 %v2948_v8 }
  0x53   :  { %2085 = vmatmul.mubr.f32.gmra.mrb[4].mxu0 %v74_v34  ;;  %2165 = vmatmul.mubr.f32.gmra.mrb[4].mxu1 %v413_v35  ;;  %v745_v34 = vld [vmem:[#allocation2 + $0xb0] sm:$0xff]  ;;  %v1077_v35 = vld [vmem:[#allocation2 + $0xb8] sm:$0xff] }
  0x54   :  { %2087 = vmatprep.mubr.f32.mxu0 %v75_v36  ;;  %2167 = vmatprep.mubr.f32.mxu1 %v414_v37  ;;  %v746_v36 = vld [vmem:[#allocation2 + $0xd0] sm:$0xff]  ;;  %v1078_v37 = vld [vmem:[#allocation2 + $0xd8] sm:$0xff] }
  0x55   :  { %2441 = vmatpush3.bf16.msra.mxu0 %v2948_v8  ;;  %2473 = vmatpush3.bf16.msra.mxu1 %v2948_v8  ;;  %v93_v8 = vld [vmem:[#allocation2 + $0x300] sm:$0xff] }
  0x56   :  { %2443 = vmatprep.subr.bf16.mxu0 %v2954_v13  ;;  %2475 = vmatprep.subr.bf16.mxu1 %v2954_v13 }
  0x57   :  { %2088 = vmatmul.mubr.f32.gmra.mrb[6].mxu0 %v76_v38  ;;  %2168 = vmatmul.mubr.f32.gmra.mrb[6].mxu1 %v415_v39  ;;  %v747_v38 = vld [vmem:[#allocation2 + $0xf0] sm:$0xff]  ;;  %v1079_v39 = vld [vmem:[#allocation2 + $0xf8] sm:$0xff] }
  0x58   :  { %2090 = vmatprep.mubr.f32.mxu0 %v77_v40  ;;  %2170 = vmatprep.mubr.f32.mxu1 %v416_v41  ;;  %v748_v40 = vld [vmem:[#allocation2 + $0x110] sm:$0xff]  ;;  %v1080_v41 = vld [vmem:[#allocation2 + $0x118] sm:$0xff] }
  0x59   :  { %2445 = vmatpush3.bf16.msra.mxu0 %v2954_v13  ;;  %2477 = vmatpush3.bf16.msra.mxu1 %v2954_v13  ;;  %v434_v13 = vld [vmem:[#allocation2 + $0x348] sm:$0xff] }
  0x5a   :  { %2447 = vmatprep.subr.bf16.mxu0 %v2960_v16  ;;  %2479 = vmatprep.subr.bf16.mxu1 %v2960_v16 }
  0x5b   :  { %2091 = vmatmul.mubr.f32.gmra.mrb[8].mxu0 %v78_v42  ;;  %2171 = vmatmul.mubr.f32.gmra.mrb[8].mxu1 %v417_v43  ;;  %v749_v42 = vld [vmem:[#allocation2 + $0x130] sm:$0xff]  ;;  %v1081_v43 = vld [vmem:[#allocation2 + $0x138] sm:$0xff] }
  0x5c   :  { %2093 = vmatprep.mubr.f32.mxu0 %v79_v44  ;;  %2173 = vmatprep.mubr.f32.mxu1 %v418_v45  ;;  %v750_v44 = vld [vmem:[#allocation2 + $0x150] sm:$0xff]  ;;  %v1082_v45 = vld [vmem:[#allocation2 + $0x158] sm:$0xff] }
  0x5d   :  { %2449 = vmatpush3.bf16.msra.mxu0 %v2960_v16  ;;  %2481 = vmatpush3.bf16.msra.mxu1 %v2960_v16  ;;  %v97_v16 = vld [vmem:[#allocation2 + $0x380] sm:$0xff] }
  0x5e   :  { %2451 = vmatprep.subr.bf16.mxu0 %v2966_v19  ;;  %2483 = vmatprep.subr.bf16.mxu1 %v2966_v19 }
  0x5f   :  { %2094 = vmatmul.mubr.f32.gmra.mrb[10].mxu0 %v80_v46  ;;  %2174 = vmatmul.mubr.f32.gmra.mrb[10].mxu1 %v419_v47  ;;  %v751_v46 = vld [vmem:[#allocation2 + $0x170] sm:$0xff]  ;;  %v1083_v47 = vld [vmem:[#allocation2 + $0x178] sm:$0xff] }
  0x60   :  { %2096 = vmatprep.mubr.f32.mxu0 %v81_v48  ;;  %2176 = vmatprep.mubr.f32.mxu1 %v420_v49  ;;  %v752_v48 = vld [vmem:[#allocation2 + $0x190] sm:$0xff]  ;;  %v1084_v49 = vld [vmem:[#allocation2 + $0x198] sm:$0xff] }
  0x61   :  { %2453 = vmatpush3.bf16.msra.mxu0 %v2966_v19  ;;  %2485 = vmatpush3.bf16.msra.mxu1 %v2966_v19  ;;  %v437_v19 = vld [vmem:[#allocation2 + $0x3a8] sm:$0xff] }
  0x62   :  { %2455 = vmatprep.subr.bf16.mxu0 %v2972_v22  ;;  %2487 = vmatprep.subr.bf16.mxu1 %v2972_v22 }
  0x63   :  { %2097 = vmatmul.mubr.f32.gmra.mrb[12].mxu0 %v82_v50  ;;  %2177 = vmatmul.mubr.f32.gmra.mrb[12].mxu1 %v421_v51  ;;  %v753_v50 = vld [vmem:[#allocation2 + $0x1b0] sm:$0xff]  ;;  %v1085_v51 = vld [vmem:[#allocation2 + $0x1b8] sm:$0xff] }
  0x64   :  { %2099 = vmatprep.mubr.f32.mxu0 %v83_v52  ;;  %2179 = vmatprep.mubr.f32.mxu1 %v422_v53  ;;  %v754_v52 = vld [vmem:[#allocation2 + $0x1d0] sm:$0xff]  ;;  %v1086_v53 = vld [vmem:[#allocation2 + $0x1d8] sm:$0xff] }
  0x65   :  { %2457 = vmatpush3.bf16.msra.mxu0 %v2972_v22  ;;  %2489 = vmatpush3.bf16.msra.mxu1 %v2972_v22  ;;  %v100_v22 = vld [vmem:[#allocation2 + $0x3e0] sm:$0xff] }
  0x66   :  { %2459 = vmatprep.subr.bf16.mxu0 %v2978_v25  ;;  %2491 = vmatprep.subr.bf16.mxu1 %v2978_v25 }
  0x67   :  { %2100 = vmatmul.mubr.f32.gmra.mrb[14].mxu0 %v84_v54  ;;  %2180 = vmatmul.mubr.f32.gmra.mrb[14].mxu1 %v423_v55  ;;  %v755_v54 = vld [vmem:[#allocation2 + $0x1f0] sm:$0xff]  ;;  %v1087_v55 = vld [vmem:[#allocation2 + $0x1f8] sm:$0xff] }
  0x68   :  { %2102 = vmatprep.mubr.f32.mxu0 %v85_v56  ;;  %2182 = vmatprep.mubr.f32.mxu1 %v424_v57  ;;  %v756_v56 = vld [vmem:[#allocation2 + $0x210] sm:$0xff]  ;;  %v1088_v57 = vld [vmem:[#allocation2 + $0x218] sm:$0xff] }
  0x69   :  { %2461 = vmatpush3.bf16.msra.mxu0 %v2978_v25  ;;  %2493 = vmatpush3.bf16.msra.mxu1 %v2978_v25  ;;  %v1072_v25 = vld [vmem:[#allocation2 + $0x18] sm:$0xff] }
  0x6b   :  { %2103 = vmatmul.mubr.f32.gmra.mrb[16].mxu0 %v86_v58  ;;  %2183 = vmatmul.mubr.f32.gmra.mrb[16].mxu1 %v425_v59  ;;  %v757_v58 = vld [vmem:[#allocation2 + $0x230] sm:$0xff]  ;;  %v1089_v59 = vld [vmem:[#allocation2 + $0x238] sm:$0xff] }
  0x6c   :  { %2105 = vmatprep.mubr.f32.mxu0 %v87_v60  ;;  %2185 = vmatprep.mubr.f32.mxu1 %v426_v61  ;;  %v758_v60 = vld [vmem:[#allocation2 + $0x250] sm:$0xff]  ;;  %v1090_v61 = vld [vmem:[#allocation2 + $0x258] sm:$0xff] }
  0x6f   :  { %2106 = vmatmul.mubr.f32.gmra.mrb[18].mxu0 %v88_v62  ;;  %2186 = vmatmul.mubr.f32.gmra.mrb[18].mxu1 %v427_v63  ;;  %v759_v62 = vld [vmem:[#allocation2 + $0x270] sm:$0xff]  ;;  %v1091_v63 = vld [vmem:[#allocation2 + $0x278] sm:$0xff] }
  0x70   :  { %2108 = vmatprep.mubr.f32.mxu0 %v89_v0  ;;  %2188 = vmatprep.mubr.f32.mxu1 %v428_v1  ;;  %v760_v0 = vld [vmem:[#allocation2 + $0x290] sm:$0xff]  ;;  %v1092_v1 = vld [vmem:[#allocation2 + $0x298] sm:$0xff] }
  0x73   :  { %2109 = vmatmul.mubr.f32.gmra.mrb[20].mxu0 %v90_v2  ;;  %2189 = vmatmul.mubr.f32.gmra.mrb[20].mxu1 %v429_v3  ;;  %v761_v2 = vld [vmem:[#allocation2 + $0x2b0] sm:$0xff]  ;;  %v1093_v3 = vld [vmem:[#allocation2 + $0x2b8] sm:$0xff] }
  0x74   :  { %2111 = vmatprep.mubr.f32.mxu0 %v91_v4  ;;  %2191 = vmatprep.mubr.f32.mxu1 %v430_v5  ;;  %v762_v4 = vld [vmem:[#allocation2 + $0x2d0] sm:$0xff]  ;;  %v1094_v5 = vld [vmem:[#allocation2 + $0x2d8] sm:$0xff] }
  0x77   :  { %2112 = vmatmul.mubr.f32.gmra.mrb[22].mxu0 %v92_v6  ;;  %2192 = vmatmul.mubr.f32.gmra.mrb[22].mxu1 %v431_v7  ;;  %v763_v6 = vld [vmem:[#allocation2 + $0x2f0] sm:$0xff]  ;;  %v1095_v7 = vld [vmem:[#allocation2 + $0x2f8] sm:$0xff] }
  0x78   :  { %2114 = vmatprep.mubr.f32.mxu0 %v93_v8  ;;  %2194 = vmatprep.mubr.f32.mxu1 %v432_v9  ;;  %v764_v8 = vld [vmem:[#allocation2 + $0x310] sm:$0xff]  ;;  %v1096_v9 = vld [vmem:[#allocation2 + $0x318] sm:$0xff] }
  0x7b   :  { %2115 = vmatmul.mubr.f32.gmra.mrb[24].mxu0 %v94_v10  ;;  %2195 = vmatmul.mubr.f32.gmra.mrb[24].mxu1 %v433_v11  ;;  %v765_v10 = vld [vmem:[#allocation2 + $0x330] sm:$0xff]  ;;  %v1097_v11 = vld [vmem:[#allocation2 + $0x338] sm:$0xff] }
  0x7c   :  { %2117 = vmatprep.mubr.f32.mxu0 %v95_v12  ;;  %2197 = vmatprep.mubr.f32.mxu1 %v434_v13  ;;  %v766_v12 = vld [vmem:[#allocation2 + $0x350] sm:$0xff]  ;;  %v1098_v13 = vld [vmem:[#allocation2 + $0x358] sm:$0xff] }
  0x7f   :  { %2118 = vmatmul.mubr.f32.gmra.mrb[26].mxu0 %v96_v14  ;;  %2198 = vmatmul.mubr.f32.gmra.mrb[26].mxu1 %v435_v15  ;;  %v767_v14 = vld [vmem:[#allocation2 + $0x370] sm:$0xff]  ;;  %v1099_v15 = vld [vmem:[#allocation2 + $0x378] sm:$0xff] }
  0x80   :  { %2120 = vmatprep.mubr.f32.mxu0 %v97_v16  ;;  %2200 = vmatprep.mubr.f32.mxu1 %v436_v17  ;;  %v768_v16 = vld [vmem:[#allocation2 + $0x390] sm:$0xff]  ;;  %v1100_v17 = vld [vmem:[#allocation2 + $0x398] sm:$0xff] }
  0x83   :  { %2121 = vmatmul.mubr.f32.gmra.mrb[28].mxu0 %v98_v18  ;;  %2201 = vmatmul.mubr.f32.gmra.mrb[28].mxu1 %v437_v19  ;;  %v769_v18 = vld [vmem:[#allocation2 + $0x3b0] sm:$0xff]  ;;  %v1101_v19 = vld [vmem:[#allocation2 + $0x3b8] sm:$0xff] }
  0x84   :  { %2123 = vmatprep.mubr.f32.mxu0 %v99_v20  ;;  %2203 = vmatprep.mubr.f32.mxu1 %v438_v21  ;;  %v770_v20 = vld [vmem:[#allocation2 + $0x3d0] sm:$0xff]  ;;  %v1102_v21 = vld [vmem:[#allocation2 + $0x3d8] sm:$0xff] }
  0x87   :  { %2124 = vmatmul.mubr.f32.gmra.mrb[30].mxu0 %v100_v22  ;;  %2204 = vmatmul.mubr.f32.gmra.mrb[30].mxu1 %v439_v23  ;;  %v771_v22 = vld [vmem:[#allocation2 + $0x3f0] sm:$0xff]  ;;  %v1103_v23 = vld [vmem:[#allocation2 + $0x3f8] sm:$0xff] }
  0x88   :  { %2238 = vmatprep.mubr.f32.mxu0 %v740_v24  ;;  %2318 = vmatprep.mubr.f32.mxu1 %v1072_v25  ;;  %v3021_v24 = vld [vmem:[%s3588_s2] ss:$0 sm:$0xff] }
  0x8b   :  { %2239 = vmatmul.mubr.f32.vlgmr.msra.gmra.mrb[32].mxu0 %v741_v26  ;;  %2319 = vmatmul.mubr.f32.vlgmr.msra.gmra.mrb[32].mxu1 %v1073_v27 }
  0x8c   :  { %2241 = vmatprep.mubr.f32.mxu0 %v742_v28  ;;  %2321 = vmatprep.mubr.f32.mxu1 %v1074_v29 }
  0x8f   :  { %2242 = vmatmul.mubr.f32.gmra.mrb[34].mxu0 %v743_v30  ;;  %2322 = vmatmul.mubr.f32.gmra.mrb[34].mxu1 %v1075_v31 }
  0x90   :  { %2244 = vmatprep.mubr.f32.mxu0 %v744_v32  ;;  %2324 = vmatprep.mubr.f32.mxu1 %v1076_v33 }
  0x93   :  { %2245 = vmatmul.mubr.f32.gmra.mrb[36].mxu0 %v745_v34  ;;  %2325 = vmatmul.mubr.f32.gmra.mrb[36].mxu1 %v1077_v35 }
  0x94   :  { %2247 = vmatprep.mubr.f32.mxu0 %v746_v36  ;;  %2327 = vmatprep.mubr.f32.mxu1 %v1078_v37 }
  0x97   :  { %2248 = vmatmul.mubr.f32.gmra.mrb[38].mxu0 %v747_v38  ;;  %2328 = vmatmul.mubr.f32.gmra.mrb[38].mxu1 %v1079_v39 }
  0x98   :  { %2250 = vmatprep.mubr.f32.mxu0 %v748_v40  ;;  %2330 = vmatprep.mubr.f32.mxu1 %v1080_v41 }
  0x9b   :  { %2251 = vmatmul.mubr.f32.gmra.mrb[40].mxu0 %v749_v42  ;;  %2331 = vmatmul.mubr.f32.gmra.mrb[40].mxu1 %v1081_v43 }
  0x9c   :  { %2253 = vmatprep.mubr.f32.mxu0 %v750_v44  ;;  %2333 = vmatprep.mubr.f32.mxu1 %v1082_v45 }
  0x9f   :  { %2254 = vmatmul.mubr.f32.gmra.mrb[42].mxu0 %v751_v46  ;;  %2334 = vmatmul.mubr.f32.gmra.mrb[42].mxu1 %v1083_v47 }
  0xa0   :  { %2256 = vmatprep.mubr.f32.mxu0 %v752_v48  ;;  %2336 = vmatprep.mubr.f32.mxu1 %v1084_v49 }
  0xa3   :  { %2257 = vmatmul.mubr.f32.gmra.mrb[44].mxu0 %v753_v50  ;;  %2337 = vmatmul.mubr.f32.gmra.mrb[44].mxu1 %v1085_v51 }
  0xa4   :  { %2259 = vmatprep.mubr.f32.mxu0 %v754_v52  ;;  %2339 = vmatprep.mubr.f32.mxu1 %v1086_v53 }
  0xa7   :  { %2260 = vmatmul.mubr.f32.gmra.mrb[46].mxu0 %v755_v54  ;;  %2340 = vmatmul.mubr.f32.gmra.mrb[46].mxu1 %v1087_v55 }
  0xa8   :  { %2262 = vmatprep.mubr.f32.mxu0 %v756_v56  ;;  %2342 = vmatprep.mubr.f32.mxu1 %v1088_v57 }
  0xab   :  { %2263 = vmatmul.mubr.f32.gmra.mrb[48].mxu0 %v757_v58  ;;  %2343 = vmatmul.mubr.f32.gmra.mrb[48].mxu1 %v1089_v59 }
  0xac   :  { %2265 = vmatprep.mubr.f32.mxu0 %v758_v60  ;;  %2345 = vmatprep.mubr.f32.mxu1 %v1090_v61 }
  0xaf   :  { %2266 = vmatmul.mubr.f32.gmra.mrb[50].mxu0 %v759_v62  ;;  %2346 = vmatmul.mubr.f32.gmra.mrb[50].mxu1 %v1091_v63 }
  0xb0   :  { %2268 = vmatprep.mubr.f32.mxu0 %v760_v0  ;;  %2348 = vmatprep.mubr.f32.mxu1 %v1092_v1 }
  0xb3   :  { %2269 = vmatmul.mubr.f32.gmra.mrb[52].mxu0 %v761_v2  ;;  %2349 = vmatmul.mubr.f32.gmra.mrb[52].mxu1 %v1093_v3 }
  0xb4   :  { %2271 = vmatprep.mubr.f32.mxu0 %v762_v4  ;;  %2351 = vmatprep.mubr.f32.mxu1 %v1094_v5 }
  0xb7   :  { %2272 = vmatmul.mubr.f32.gmra.mrb[54].mxu0 %v763_v6  ;;  %2352 = vmatmul.mubr.f32.gmra.mrb[54].mxu1 %v1095_v7 }
  0xb8   :  { %2274 = vmatprep.mubr.f32.mxu0 %v764_v8  ;;  %2354 = vmatprep.mubr.f32.mxu1 %v1096_v9 }
  0xbb   :  { %2275 = vmatmul.mubr.f32.gmra.mrb[56].mxu0 %v765_v10  ;;  %2355 = vmatmul.mubr.f32.gmra.mrb[56].mxu1 %v1097_v11 }
  0xbc   :  { %2277 = vmatprep.mubr.f32.mxu0 %v766_v12  ;;  %2357 = vmatprep.mubr.f32.mxu1 %v1098_v13 }
  0xbf   :  { %2278 = vmatmul.mubr.f32.gmra.mrb[58].mxu0 %v767_v14  ;;  %2358 = vmatmul.mubr.f32.gmra.mrb[58].mxu1 %v1099_v15 }
  0xc0   :  { %2280 = vmatprep.mubr.f32.mxu0 %v768_v16  ;;  %2360 = vmatprep.mubr.f32.mxu1 %v1100_v17 }
  0xc3   :  { %2281 = vmatmul.mubr.f32.gmra.mrb[60].mxu0 %v769_v18  ;;  %2361 = vmatmul.mubr.f32.gmra.mrb[60].mxu1 %v1101_v19 }
  0xc4   :  { %2283 = vmatprep.mubr.f32.mxu0 %v770_v20  ;;  %2363 = vmatprep.mubr.f32.mxu1 %v1102_v21 }
  0xc7   :  { %2284 = vmatmul.mubr.f32.gmra.mrb[62].mxu0 %v771_v22  ;;  %2364 = vmatmul.mubr.f32.gmra.mrb[62].mxu1 %v1103_v23 }
 0x11e   :  { %v2080_v25 = vpop.f32.mrb[0].mxu0  ;;  %v2160_v26 = vpop.f32.mrb[0].mxu1 }
 0x11f   :  { %v179_v27 = vadd.f32 %v2080_v25, %v3021_v24  ;;  %v173_v28 = vpop.f32.mrb[1].mxu0  ;;  %v512_v29 = vadd.f32 %v2160_v26, %v3021_v24  ;;  %v506_v30 = vpop.f32.mrb[1].mxu1 }
 0x120   :  { %v174_v31 = vadd.f32 %v3021_v24, %v173_v28  ;;  %v507_v32 = vadd.f32 %v3021_v24, %v506_v30 }
 0x121   :  { %2513 = vtanh.f32 %v179_v27 }
 0x122   :  { %2515 = vtanh.f32 %v174_v31  ;;  %v2083_v33 = vpop.f32.mrb[2].mxu0  ;;  %v2163_v34 = vpop.f32.mrb[2].mxu1 }
 0x123   :  { %2517 = vtanh.f32 %v512_v29  ;;  %v189_v35 = vadd.f32 %v2083_v33, %v3021_v24  ;;  %v522_v36 = vadd.f32 %v2163_v34, %v3021_v24  ;;  %v183_v37 = vpop.f32.mrb[3].mxu0  ;;  %v516_v38 = vpop.f32.mrb[3].mxu1 }
 0x124   :  { %2519 = vtanh.f32 %v507_v32  ;;  %v184_v39 = vadd.f32 %v3021_v24, %v183_v37  ;;  %v517_v40 = vadd.f32 %v3021_v24, %v516_v38 }
 0x125   :  { %2521 = vtanh.f32 %v189_v35 }
 0x126   :  { %2523 = vtanh.f32 %v522_v36  ;;  %v2086_v41 = vpop.f32.mrb[4].mxu0  ;;  %v2166_v42 = vpop.f32.mrb[4].mxu1 }
 0x127   :  { %2525 = vtanh.f32 %v184_v39  ;;  %v199_v43 = vadd.f32 %v2086_v41, %v3021_v24  ;;  %v532_v44 = vadd.f32 %v2166_v42, %v3021_v24  ;;  %v193_v45 = vpop.f32.mrb[5].mxu0  ;;  %v526_v46 = vpop.f32.mrb[5].mxu1 }
 0x128   :  { %2527 = vtanh.f32 %v517_v40  ;;  %v194_v47 = vadd.f32 %v3021_v24, %v193_v45  ;;  %v527_v48 = vadd.f32 %v3021_v24, %v526_v46 }
 0x129   :  { %2529 = vtanh.f32 %v199_v43 }
 0x12a   :  { %2531 = vtanh.f32 %v532_v44  ;;  %v2089_v49 = vpop.f32.mrb[6].mxu0  ;;  %v2169_v50 = vpop.f32.mrb[6].mxu1 }
 0x12b   :  { %v2514_v51 = vpop.eup %2513  ;;  %2533 = vtanh.f32 %v194_v47  ;;  %v209_v52 = vadd.f32 %v2089_v49, %v3021_v24  ;;  %v542_v53 = vadd.f32 %v2169_v50, %v3021_v24  ;;  %v203_v54 = vpop.f32.mrb[7].mxu0 }
 0x12c   :  { %v536_v55 = vpop.f32.mrb[7].mxu1  ;;  %v2516_v56 = vpop.eup %2515  ;;  %2535 = vtanh.f32 %v527_v48  ;;  %v204_v57 = vadd.f32 %v3021_v24, %v203_v54 }
 0x12d   :  { %v537_v58 = vadd.f32 %v3021_v24, %v536_v55  ;;  %v2518_v59 = vpop.eup %2517  ;;  %v364_v60 = vadd.f32 %v2516_v56, %v2514_v51  ;;  %2537 = vtanh.f32 %v209_v52 }
 0x12e   :  { %v2520_v61 = vpop.eup %2519  ;;  %2539 = vtanh.f32 %v542_v53  ;;  %v2092_v62 = vpop.f32.mrb[8].mxu0 }
 0x12f   :  { %v2172_v63 = vpop.f32.mrb[8].mxu1  ;;  %v2522_v0 = vpop.eup %2521  ;;  %v697_v1 = vadd.f32 %v2520_v61, %v2518_v59  ;;  %2541 = vtanh.f32 %v204_v57  ;;  %v219_v2 = vadd.f32 %v2092_v62, %v3021_v24 }
 0x130   :  { %v552_v3 = vadd.f32 %v2172_v63, %v3021_v24  ;;  %v213_v4 = vpop.f32.mrb[9].mxu0  ;;  %v546_v5 = vpop.f32.mrb[9].mxu1  ;;  %2543 = vtanh.f32 %v537_v58 }
 0x131   :  { %v2524_v6 = vpop.eup %2523  ;;  %v214_v7 = vadd.f32 %v3021_v24, %v213_v4  ;;  %v547_v8 = vadd.f32 %v3021_v24, %v546_v5  ;;  %2545 = vtanh.f32 %v219_v2 }
 0x132   :  { %v2526_v9 = vpop.eup %2525  ;;  %2547 = vtanh.f32 %v552_v3  ;;  %v2095_v12 = vpop.f32.mrb[10].mxu0 }
 0x133   :  { %v2528_v10 = vpop.eup %2527  ;;  %v365_v11 = vadd.f32 %v2526_v9, %v364_v60  ;;  %v2175_v13 = vpop.f32.mrb[10].mxu1  ;;  %2549 = vtanh.f32 %v214_v7  ;;  %v229_v16 = vadd.f32 %v2095_v12, %v3021_v24 }
 0x134   :  { %v2530_v14 = vpop.eup %2529  ;;  %v698_v15 = vadd.f32 %v2528_v10, %v697_v1  ;;  %v562_v17 = vadd.f32 %v2175_v13, %v3021_v24  ;;  %v223_v18 = vpop.f32.mrb[11].mxu0  ;;  %2551 = vtanh.f32 %v547_v8 }
 0x135   :  { %v556_v19 = vpop.f32.mrb[11].mxu1  ;;  %v2532_v20 = vpop.eup %2531  ;;  %v366_v21 = vadd.f32 %v2522_v0, %v365_v11  ;;  %v224_v22 = vadd.f32 %v3021_v24, %v223_v18  ;;  %2553 = vtanh.f32 %v229_v16 }
 0x136   :  { %v557_v23 = vadd.f32 %v3021_v24, %v556_v19  ;;  %v2534_v25 = vpop.eup %2533  ;;  %v699_v26 = vadd.f32 %v2524_v6, %v698_v15  ;;  %2555 = vtanh.f32 %v562_v17  ;;  %v2098_v29 = vpop.f32.mrb[12].mxu0 }
 0x137   :  { %v2536_v27 = vpop.eup %2535  ;;  %v367_v28 = vadd.f32 %v2534_v25, %v366_v21  ;;  %v2178_v30 = vpop.f32.mrb[12].mxu1  ;;  %2557 = vtanh.f32 %v224_v22  ;;  %v239_v33 = vadd.f32 %v2098_v29, %v3021_v24 }
 0x138   :  { %v2538_v31 = vpop.eup %2537  ;;  %v700_v32 = vadd.f32 %v2536_v27, %v699_v26  ;;  %v572_v34 = vadd.f32 %v2178_v30, %v3021_v24  ;;  %v233_v35 = vpop.f32.mrb[13].mxu0  ;;  %2559 = vtanh.f32 %v557_v23 }
 0x139   :  { %v566_v36 = vpop.f32.mrb[13].mxu1  ;;  %v2540_v37 = vpop.eup %2539  ;;  %v368_v38 = vadd.f32 %v2530_v14, %v367_v28  ;;  %v234_v39 = vadd.f32 %v3021_v24, %v233_v35  ;;  %2561 = vtanh.f32 %v239_v33 }
 0x13a   :  { %v567_v40 = vadd.f32 %v3021_v24, %v566_v36  ;;  %v2542_v41 = vpop.eup %2541  ;;  %v701_v42 = vadd.f32 %v2532_v20, %v700_v32  ;;  %2563 = vtanh.f32 %v572_v34  ;;  %v2101_v45 = vpop.f32.mrb[14].mxu0 }
 0x13b   :  { %v2544_v43 = vpop.eup %2543  ;;  %v369_v44 = vadd.f32 %v2542_v41, %v368_v38  ;;  %v2181_v46 = vpop.f32.mrb[14].mxu1  ;;  %2565 = vtanh.f32 %v234_v39  ;;  %v249_v49 = vadd.f32 %v2101_v45, %v3021_v24 }
 0x13c   :  { %v2546_v47 = vpop.eup %2545  ;;  %v702_v48 = vadd.f32 %v2544_v43, %v701_v42  ;;  %v582_v50 = vadd.f32 %v2181_v46, %v3021_v24  ;;  %v243_v51 = vpop.f32.mrb[15].mxu0  ;;  %2567 = vtanh.f32 %v567_v40 }
 0x13d   :  { %v576_v52 = vpop.f32.mrb[15].mxu1  ;;  %v2548_v53 = vpop.eup %2547  ;;  %v370_v54 = vadd.f32 %v2538_v31, %v369_v44  ;;  %v244_v55 = vadd.f32 %v3021_v24, %v243_v51  ;;  %2569 = vtanh.f32 %v249_v49 }
 0x13e   :  { %v577_v56 = vadd.f32 %v3021_v24, %v576_v52  ;;  %v2550_v57 = vpop.eup %2549  ;;  %v703_v58 = vadd.f32 %v2540_v37, %v702_v48  ;;  %2571 = vtanh.f32 %v582_v50  ;;  %v2104_v61 = vpop.f32.mrb[16].mxu0 }
 0x13f   :  { %v2552_v59 = vpop.eup %2551  ;;  %v371_v60 = vadd.f32 %v2550_v57, %v370_v54  ;;  %v2184_v62 = vpop.f32.mrb[16].mxu1  ;;  %2573 = vtanh.f32 %v244_v55  ;;  %v259_v1 = vadd.f32 %v2104_v61, %v3021_v24 }
 0x140   :  { %v2554_v63 = vpop.eup %2553  ;;  %v704_v0 = vadd.f32 %v2552_v59, %v703_v58  ;;  %v592_v2 = vadd.f32 %v2184_v62, %v3021_v24  ;;  %v253_v3 = vpop.f32.mrb[17].mxu0  ;;  %2575 = vtanh.f32 %v577_v56 }
 0x141   :  { %v586_v4 = vpop.f32.mrb[17].mxu1  ;;  %v2556_v5 = vpop.eup %2555  ;;  %v372_v6 = vadd.f32 %v2546_v47, %v371_v60  ;;  %v254_v7 = vadd.f32 %v3021_v24, %v253_v3  ;;  %2577 = vtanh.f32 %v259_v1 }
 0x142   :  { %v587_v8 = vadd.f32 %v3021_v24, %v586_v4  ;;  %v2558_v9 = vpop.eup %2557  ;;  %v705_v10 = vadd.f32 %v2548_v53, %v704_v0  ;;  %2579 = vtanh.f32 %v592_v2  ;;  %v2107_v13 = vpop.f32.mrb[18].mxu0 }
 0x143   :  { %v2560_v11 = vpop.eup %2559  ;;  %v373_v12 = vadd.f32 %v2558_v9, %v372_v6  ;;  %v2187_v14 = vpop.f32.mrb[18].mxu1  ;;  %2581 = vtanh.f32 %v254_v7  ;;  %v269_v17 = vadd.f32 %v2107_v13, %v3021_v24 }
 0x144   :  { %v2562_v15 = vpop.eup %2561  ;;  %v706_v16 = vadd.f32 %v2560_v11, %v705_v10  ;;  %v602_v18 = vadd.f32 %v2187_v14, %v3021_v24  ;;  %v263_v19 = vpop.f32.mrb[19].mxu0  ;;  %2583 = vtanh.f32 %v587_v8 }
 0x145   :  { %v596_v20 = vpop.f32.mrb[19].mxu1  ;;  %v2564_v21 = vpop.eup %2563  ;;  %v374_v22 = vadd.f32 %v2554_v63, %v373_v12  ;;  %v264_v23 = vadd.f32 %v3021_v24, %v263_v19  ;;  %2585 = vtanh.f32 %v269_v17 }
 0x146   :  { %v597_v25 = vadd.f32 %v3021_v24, %v596_v20  ;;  %v2566_v26 = vpop.eup %2565  ;;  %v707_v27 = vadd.f32 %v2556_v5, %v706_v16  ;;  %2587 = vtanh.f32 %v602_v18  ;;  %v2110_v30 = vpop.f32.mrb[20].mxu0 }
 0x147   :  { %v2568_v28 = vpop.eup %2567  ;;  %v375_v29 = vadd.f32 %v2566_v26, %v374_v22  ;;  %v2190_v31 = vpop.f32.mrb[20].mxu1  ;;  %2589 = vtanh.f32 %v264_v23  ;;  %v279_v34 = vadd.f32 %v2110_v30, %v3021_v24 }
 0x148   :  { %v2570_v32 = vpop.eup %2569  ;;  %v708_v33 = vadd.f32 %v2568_v28, %v707_v27  ;;  %v612_v35 = vadd.f32 %v2190_v31, %v3021_v24  ;;  %v273_v36 = vpop.f32.mrb[21].mxu0  ;;  %2591 = vtanh.f32 %v597_v25 }
 0x149   :  { %v606_v37 = vpop.f32.mrb[21].mxu1  ;;  %v2572_v38 = vpop.eup %2571  ;;  %v376_v39 = vadd.f32 %v2562_v15, %v375_v29  ;;  %v274_v40 = vadd.f32 %v3021_v24, %v273_v36  ;;  %2593 = vtanh.f32 %v279_v34 }
 0x14a   :  { %v607_v41 = vadd.f32 %v3021_v24, %v606_v37  ;;  %v2574_v42 = vpop.eup %2573  ;;  %v709_v43 = vadd.f32 %v2564_v21, %v708_v33  ;;  %2595 = vtanh.f32 %v612_v35  ;;  %v2113_v46 = vpop.f32.mrb[22].mxu0 }
 0x14b   :  { %v2576_v44 = vpop.eup %2575  ;;  %v377_v45 = vadd.f32 %v2574_v42, %v376_v39  ;;  %v2193_v47 = vpop.f32.mrb[22].mxu1  ;;  %2597 = vtanh.f32 %v274_v40  ;;  %v289_v50 = vadd.f32 %v2113_v46, %v3021_v24 }
 0x14c   :  { %v2578_v48 = vpop.eup %2577  ;;  %v710_v49 = vadd.f32 %v2576_v44, %v709_v43  ;;  %v622_v51 = vadd.f32 %v2193_v47, %v3021_v24  ;;  %v283_v52 = vpop.f32.mrb[23].mxu0  ;;  %2599 = vtanh.f32 %v607_v41 }
 0x14d   :  { %v616_v53 = vpop.f32.mrb[23].mxu1  ;;  %v2580_v54 = vpop.eup %2579  ;;  %v378_v55 = vadd.f32 %v2570_v32, %v377_v45  ;;  %v284_v56 = vadd.f32 %v3021_v24, %v283_v52  ;;  %2601 = vtanh.f32 %v289_v50 }
 0x14e   :  { %v617_v57 = vadd.f32 %v3021_v24, %v616_v53  ;;  %v2582_v58 = vpop.eup %2581  ;;  %v711_v59 = vadd.f32 %v2572_v38, %v710_v49  ;;  %2603 = vtanh.f32 %v622_v51  ;;  %v2116_v62 = vpop.f32.mrb[24].mxu0 }
 0x14f   :  { %v2584_v60 = vpop.eup %2583  ;;  %v379_v61 = vadd.f32 %v2582_v58, %v378_v55  ;;  %v2196_v63 = vpop.f32.mrb[24].mxu1  ;;  %2605 = vtanh.f32 %v284_v56  ;;  %v299_v2 = vadd.f32 %v2116_v62, %v3021_v24 }
 0x150   :  { %v2586_v0 = vpop.eup %2585  ;;  %v712_v1 = vadd.f32 %v2584_v60, %v711_v59  ;;  %v632_v3 = vadd.f32 %v2196_v63, %v3021_v24  ;;  %v293_v4 = vpop.f32.mrb[25].mxu0  ;;  %2607 = vtanh.f32 %v617_v57 }
 0x151   :  { %v626_v5 = vpop.f32.mrb[25].mxu1  ;;  %v2588_v6 = vpop.eup %2587  ;;  %v380_v7 = vadd.f32 %v2578_v48, %v379_v61  ;;  %v294_v8 = vadd.f32 %v3021_v24, %v293_v4  ;;  %2609 = vtanh.f32 %v299_v2 }
 0x152   :  { %v627_v9 = vadd.f32 %v3021_v24, %v626_v5  ;;  %v2590_v10 = vpop.eup %2589  ;;  %v713_v11 = vadd.f32 %v2580_v54, %v712_v1  ;;  %2611 = vtanh.f32 %v632_v3  ;;  %v2119_v14 = vpop.f32.mrb[26].mxu0 }
 0x153   :  { %v2592_v12 = vpop.eup %2591  ;;  %v381_v13 = vadd.f32 %v2590_v10, %v380_v7  ;;  %v2199_v15 = vpop.f32.mrb[26].mxu1  ;;  %2613 = vtanh.f32 %v294_v8  ;;  %v309_v18 = vadd.f32 %v2119_v14, %v3021_v24 }
 0x154   :  { %v2594_v16 = vpop.eup %2593  ;;  %v714_v17 = vadd.f32 %v2592_v12, %v713_v11  ;;  %v642_v19 = vadd.f32 %v2199_v15, %v3021_v24  ;;  %v303_v20 = vpop.f32.mrb[27].mxu0  ;;  %2615 = vtanh.f32 %v627_v9 }
 0x155   :  { %v636_v21 = vpop.f32.mrb[27].mxu1  ;;  %v2596_v22 = vpop.eup %2595  ;;  %v382_v23 = vadd.f32 %v2586_v0, %v381_v13  ;;  %v304_v25 = vadd.f32 %v3021_v24, %v303_v20  ;;  %2617 = vtanh.f32 %v309_v18 }
 0x156   :  { %v637_v26 = vadd.f32 %v3021_v24, %v636_v21  ;;  %v2598_v27 = vpop.eup %2597  ;;  %v715_v28 = vadd.f32 %v2588_v6, %v714_v17  ;;  %2619 = vtanh.f32 %v642_v19  ;;  %v2122_v31 = vpop.f32.mrb[28].mxu0 }
 0x157   :  { %v2600_v29 = vpop.eup %2599  ;;  %v383_v30 = vadd.f32 %v2598_v27, %v382_v23  ;;  %v2202_v32 = vpop.f32.mrb[28].mxu1  ;;  %2621 = vtanh.f32 %v304_v25  ;;  %v319_v35 = vadd.f32 %v2122_v31, %v3021_v24 }
 0x158   :  { %v2602_v33 = vpop.eup %2601  ;;  %v716_v34 = vadd.f32 %v2600_v29, %v715_v28  ;;  %v652_v36 = vadd.f32 %v2202_v32, %v3021_v24  ;;  %v313_v37 = vpop.f32.mrb[29].mxu0  ;;  %2623 = vtanh.f32 %v637_v26 }
 0x159   :  { %v646_v38 = vpop.f32.mrb[29].mxu1  ;;  %v2604_v39 = vpop.eup %2603  ;;  %v384_v40 = vadd.f32 %v2594_v16, %v383_v30  ;;  %v314_v41 = vadd.f32 %v3021_v24, %v313_v37  ;;  %2625 = vtanh.f32 %v319_v35 }
 0x15a   :  { %v647_v42 = vadd.f32 %v3021_v24, %v646_v38  ;;  %v2606_v43 = vpop.eup %2605  ;;  %v717_v44 = vadd.f32 %v2596_v22, %v716_v34  ;;  %2627 = vtanh.f32 %v652_v36  ;;  %v2125_v47 = vpop.f32.mrb[30].mxu0 }
 0x15b   :  { %v2608_v45 = vpop.eup %2607  ;;  %v385_v46 = vadd.f32 %v2606_v43, %v384_v40  ;;  %v2205_v48 = vpop.f32.mrb[30].mxu1  ;;  %2629 = vtanh.f32 %v314_v41  ;;  %v329_v51 = vadd.f32 %v2125_v47, %v3021_v24 }
 0x15c   :  { %v2610_v49 = vpop.eup %2609  ;;  %v718_v50 = vadd.f32 %v2608_v45, %v717_v44  ;;  %v662_v52 = vadd.f32 %v2205_v48, %v3021_v24  ;;  %v323_v53 = vpop.f32.mrb[31].mxu0  ;;  %2631 = vtanh.f32 %v647_v42 }
 0x15d   :  { %v656_v54 = vpop.f32.mrb[31].mxu1  ;;  %v2612_v55 = vpop.eup %2611  ;;  %v386_v56 = vadd.f32 %v2602_v33, %v385_v46  ;;  %v324_v57 = vadd.f32 %v3021_v24, %v323_v53  ;;  %2633 = vtanh.f32 %v329_v51 }
 0x15e   :  { %v657_v58 = vadd.f32 %v3021_v24, %v656_v54  ;;  %v2614_v59 = vpop.eup %2613  ;;  %v719_v60 = vadd.f32 %v2604_v39, %v718_v50  ;;  %2635 = vtanh.f32 %v662_v52  ;;  %v2240_v63 = vpop.f32.mrb[32].mxu0 }
 0x15f   :  { %v2616_v61 = vpop.eup %2615  ;;  %v387_v62 = vadd.f32 %v2614_v59, %v386_v56  ;;  %v2320_v0 = vpop.f32.mrb[32].mxu1  ;;  %2637 = vtanh.f32 %v324_v57  ;;  %v844_v3 = vadd.f32 %v2240_v63, %v3021_v24 }
 0x160   :  { %v2618_v1 = vpop.eup %2617  ;;  %v720_v2 = vadd.f32 %v2616_v61, %v719_v60  ;;  %v838_v4 = vpop.f32.mrb[33].mxu0  ;;  %v1176_v5 = vadd.f32 %v2320_v0, %v3021_v24  ;;  %2639 = vtanh.f32 %v657_v58 }
 0x161   :  { %v1170_v6 = vpop.f32.mrb[33].mxu1  ;;  %v2620_v7 = vpop.eup %2619  ;;  %v388_v8 = vadd.f32 %v2610_v49, %v387_v62  ;;  %v839_v9 = vadd.f32 %v3021_v24, %v838_v4  ;;  %2641 = vtanh.f32 %v844_v3 }
 0x162   :  { %v1171_v10 = vadd.f32 %v3021_v24, %v1170_v6  ;;  %v2622_v11 = vpop.eup %2621  ;;  %v721_v12 = vadd.f32 %v2612_v55, %v720_v2  ;;  %v2243_v15 = vpop.f32.mrb[34].mxu0 }
 0x163   :  { %v2624_v13 = vpop.eup %2623  ;;  %v389_v14 = vadd.f32 %v2622_v11, %v388_v8  ;;  %2643 = vtanh.f32 %v839_v9  ;;  %v2323_v16 = vpop.f32.mrb[34].mxu1  ;;  %v854_v19 = vadd.f32 %v2243_v15, %v3021_v24 }
 0x164   :  { %v2626_v17 = vpop.eup %2625  ;;  %v722_v18 = vadd.f32 %v2624_v13, %v721_v12  ;;  %2645 = vtanh.f32 %v1176_v5  ;;  %v1186_v20 = vadd.f32 %v2323_v16, %v3021_v24  ;;  %v848_v21 = vpop.f32.mrb[35].mxu0 }
 0x165   :  { %v1180_v22 = vpop.f32.mrb[35].mxu1  ;;  %v2628_v23 = vpop.eup %2627  ;;  %v390_v25 = vadd.f32 %v2618_v1, %v389_v14  ;;  %2647 = vtanh.f32 %v1171_v10  ;;  %v849_v26 = vadd.f32 %v3021_v24, %v848_v21 }
 0x166   :  { %v1181_v27 = vadd.f32 %v3021_v24, %v1180_v22  ;;  %v2630_v28 = vpop.eup %2629  ;;  %v723_v29 = vadd.f32 %v2620_v7, %v722_v18  ;;  %2649 = vtanh.f32 %v854_v19  ;;  %v2246_v32 = vpop.f32.mrb[36].mxu0 }
 0x167   :  { %v2632_v30 = vpop.eup %2631  ;;  %v391_v31 = vadd.f32 %v2630_v28, %v390_v25  ;;  %2651 = vtanh.f32 %v1186_v20  ;;  %v2326_v33 = vpop.f32.mrb[36].mxu1  ;;  %v864_v36 = vadd.f32 %v2246_v32, %v3021_v24 }
 0x168   :  { %v2634_v34 = vpop.eup %2633  ;;  %v724_v35 = vadd.f32 %v2632_v30, %v723_v29  ;;  %2653 = vtanh.f32 %v849_v26  ;;  %v1196_v37 = vadd.f32 %v2326_v33, %v3021_v24  ;;  %v858_v38 = vpop.f32.mrb[37].mxu0 }
 0x169   :  { %v1190_v39 = vpop.f32.mrb[37].mxu1  ;;  %v2636_v40 = vpop.eup %2635  ;;  %2655 = vtanh.f32 %v1181_v27  ;;  %v859_v41 = vadd.f32 %v3021_v24, %v858_v38  ;;  %v392_v43 = vadd.f32 %v2626_v17, %v391_v31 }
 0x16a   :  { %v1191_v42 = vadd.f32 %v3021_v24, %v1190_v39  ;;  %v2638_v44 = vpop.eup %2637  ;;  %v725_v45 = vadd.f32 %v2628_v23, %v724_v35  ;;  %2657 = vtanh.f32 %v864_v36  ;;  %v2249_v47 = vpop.f32.mrb[38].mxu0 }
 0x16b   :  { %v2640_v46 = vpop.eup %2639  ;;  %2659 = vtanh.f32 %v1196_v37  ;;  %v2329_v48 = vpop.f32.mrb[38].mxu1  ;;  %v393_v49 = vadd.f32 %v2638_v44, %v392_v43  ;;  %v874_v52 = vadd.f32 %v2249_v47, %v3021_v24 }
 0x16c   :  { %v2642_v50 = vpop.eup %2641  ;;  %v726_v51 = vadd.f32 %v2640_v46, %v725_v45  ;;  %2661 = vtanh.f32 %v859_v41  ;;  %v1206_v53 = vadd.f32 %v2329_v48, %v3021_v24  ;;  %v868_v54 = vpop.f32.mrb[39].mxu0 }
 0x16d   :  { %v1200_v55 = vpop.f32.mrb[39].mxu1  ;;  %v2644_v56 = vpop.eup %2643  ;;  %2663 = vtanh.f32 %v1191_v42  ;;  %v869_v57 = vadd.f32 %v3021_v24, %v868_v54  ;;  %v394_v59 = vadd.f32 %v2634_v34, %v393_v49 }
 0x16e   :  { %v1201_v58 = vadd.f32 %v3021_v24, %v1200_v55  ;;  %v2646_v60 = vpop.eup %2645  ;;  %v1029_v61 = vadd.f32 %v2644_v56, %v2642_v50  ;;  %2665 = vtanh.f32 %v874_v52  ;;  %v727_v62 = vadd.f32 %v2636_v40, %v726_v51  ;;  %v2252_v0 = vpop.f32.mrb[40].mxu0 }
 0x16f   :  { %v2648_v63 = vpop.eup %2647  ;;  %2667 = vtanh.f32 %v1206_v53  ;;  %v2332_v1 = vpop.f32.mrb[40].mxu1  ;;  %v395_v2 = vrot.slane %v394_v59, 4  ;;  %v884_v5 = vadd.f32 %v2252_v0, %v3021_v24 }
 0x170   :  { %v2650_v3 = vpop.eup %2649  ;;  %v1361_v4 = vadd.f32 %v2648_v63, %v2646_v60  ;;  %2669 = vtanh.f32 %v869_v57  ;;  %v1216_v6 = vadd.f32 %v2332_v1, %v3021_v24  ;;  %v878_v7 = vpop.f32.mrb[41].mxu0  ;;  %v728_v19 = vrot.slane %v727_v62, 4 }
 0x171   :  { %v1210_v8 = vpop.f32.mrb[41].mxu1  ;;  %v2652_v9 = vpop.eup %2651  ;;  %2671 = vtanh.f32 %v1201_v58  ;;  %v879_v10 = vadd.f32 %v3021_v24, %v878_v7  ;;  %v396_v12 = vadd.f32 %v395_v2, %v394_v59 }
 0x172   :  { %v1211_v11 = vadd.f32 %v3021_v24, %v1210_v8  ;;  %v2654_v13 = vpop.eup %2653  ;;  %2673 = vtanh.f32 %v884_v5  ;;  %v2255_v16 = vpop.f32.mrb[42].mxu0  ;;  %v729_v38 = vadd.f32 %v728_v19, %v727_v62 }
 0x173   :  { %v2656_v14 = vpop.eup %2655  ;;  %v1030_v15 = vadd.f32 %v2654_v13, %v1029_v61  ;;  %2675 = vtanh.f32 %v1216_v6  ;;  %v2335_v17 = vpop.f32.mrb[42].mxu1  ;;  %v397_v18 = vrot.slane %v396_v12, 2  ;;  %v894_v22 = vadd.f32 %v2255_v16, %v3021_v24 }
 0x174   :  { %v2658_v20 = vpop.eup %2657  ;;  %v1362_v21 = vadd.f32 %v2656_v14, %v1361_v4  ;;  %2677 = vtanh.f32 %v879_v10  ;;  %v1226_v23 = vadd.f32 %v2335_v17, %v3021_v24  ;;  %v888_v25 = vpop.f32.mrb[43].mxu0  ;;  %v730_v56 = vrot.slane %v729_v38, 2 }
 0x175   :  { %v1220_v26 = vpop.f32.mrb[43].mxu1  ;;  %v2660_v27 = vpop.eup %2659  ;;  %v1031_v28 = vadd.f32 %v2650_v3, %v1030_v15  ;;  %2679 = vtanh.f32 %v1211_v11  ;;  %v889_v29 = vadd.f32 %v3021_v24, %v888_v25  ;;  %v398_v33 = vadd.f32 %v397_v18, %v396_v12  ;;  %v3122_v3 = vld [vmem:[%s3589_s3] sm:$0x1] }
 0x176   :  { %v1221_v30 = vadd.f32 %v3021_v24, %v1220_v26  ;;  %v2662_v31 = vpop.eup %2661  ;;  %v1363_v32 = vadd.f32 %v2652_v9, %v1362_v21  ;;  %2681 = vtanh.f32 %v894_v22  ;;  %v2258_v36 = vpop.f32.mrb[44].mxu0  ;;  %v731_v11 = vadd.f32 %v730_v56, %v729_v38 }
 0x177   :  { %v2664_v34 = vpop.eup %2663  ;;  %v1032_v35 = vadd.f32 %v2662_v31, %v1031_v28  ;;  %2683 = vtanh.f32 %v1226_v23  ;;  %v2338_v37 = vpop.f32.mrb[44].mxu1  ;;  %v904_v41 = vadd.f32 %v2258_v36, %v3021_v24  ;;  %v399_v51 = vrot.slane %v398_v33, 1 }
 0x178   :  { %v2666_v39 = vpop.eup %2665  ;;  %v1364_v40 = vadd.f32 %v2664_v34, %v1363_v32  ;;  %2685 = vtanh.f32 %v889_v29  ;;  %v1236_v42 = vadd.f32 %v2338_v37, %v3021_v24  ;;  %v898_v43 = vpop.f32.mrb[45].mxu0  ;;  %v732_v29 = vrot.slane %v731_v11, 1 }
 0x179   :  { %v1230_v44 = vpop.f32.mrb[45].mxu1  ;;  %v2668_v45 = vpop.eup %2667  ;;  %v1033_v46 = vadd.f32 %v2658_v20, %v1032_v35  ;;  %2687 = vtanh.f32 %v1221_v30  ;;  %v899_v47 = vadd.f32 %v3021_v24, %v898_v43  ;;  %v400_v6 = vadd.f32 %v399_v51, %v398_v33 }
 0x17a   :  { %v1231_v48 = vadd.f32 %v3021_v24, %v1230_v44  ;;  %v2670_v49 = vpop.eup %2669  ;;  %v1365_v50 = vadd.f32 %v2660_v27, %v1364_v40  ;;  %2689 = vtanh.f32 %v904_v41  ;;  %v2261_v54 = vpop.f32.mrb[46].mxu0 }
 0x17b   :  { %v2672_v52 = vpop.eup %2671  ;;  %v1034_v53 = vadd.f32 %v2670_v49, %v1033_v46  ;;  %2691 = vtanh.f32 %v1236_v42  ;;  %v2341_v55 = vpop.f32.mrb[46].mxu1  ;;  %v914_v59 = vadd.f32 %v2261_v54, %v3021_v24  ;;  %v401_v14 = vmul.f32 %v400_v6, %v3122_v3 }
 0x17c   :  { %v2674_v57 = vpop.eup %2673  ;;  %v1366_v58 = vadd.f32 %v2672_v52, %v1365_v50  ;;  %2693 = vtanh.f32 %v899_v47  ;;  %v1246_v60 = vadd.f32 %v2341_v55, %v3021_v24  ;;  %v908_v61 = vpop.f32.mrb[47].mxu0 }
 0x17d   :  { %v1240_v62 = vpop.f32.mrb[47].mxu1  ;;  %v2676_v63 = vpop.eup %2675  ;;  %v1035_v0 = vadd.f32 %v2666_v39, %v1034_v53  ;;  %2695 = vtanh.f32 %v1231_v48  ;;  %v909_v1 = vadd.f32 %v3021_v24, %v908_v61  ;;  %v403_v23 = vsel %vm402_vm0, %v401_v14, 0.0 }
 0x17e   :  { %v1241_v2 = vadd.f32 %v3021_v24, %v1240_v62  ;;  %v2678_v4 = vpop.eup %2677  ;;  %v1367_v5 = vadd.f32 %v2668_v45, %v1366_v58  ;;  %2697 = vtanh.f32 %v914_v59  ;;  %v2264_v9 = vpop.f32.mrb[48].mxu0  ;;  %404 = vadd.xlane.f32.xlu0 %v403_v23  ;;  %v733_v39 = vadd.f32 %v732_v29, %v731_v11  ;;  %v3140_v58 = vld [vmem:[%s3588_s2] ss:$0 sm:$0xff]  ;;  %s2876_s2 = smov 126  }
 0x17f   :  { %v2680_v7 = vpop.eup %2679  ;;  %v1036_v8 = vadd.f32 %v2678_v4, %v1035_v0  ;;  %2699 = vtanh.f32 %v1246_v60  ;;  %v2344_v10 = vpop.f32.mrb[48].mxu1  ;;  %v924_v25 = vadd.f32 %v2264_v9, %v3021_v24 }
 0x180   :  { %v2682_v12 = vpop.eup %2681  ;;  %v1368_v13 = vadd.f32 %v2680_v7, %v1367_v5  ;;  %2701 = vtanh.f32 %v909_v1  ;;  %v918_v15 = vpop.f32.mrb[49].mxu0  ;;  %v1256_v19 = vadd.f32 %v2344_v10, %v3021_v24  ;;  %v734_v47 = vmul.f32 %v733_v39, %v3122_v3 }
 0x181   :  { %v1250_v16 = vpop.f32.mrb[49].mxu1  ;;  %v2684_v17 = vpop.eup %2683  ;;  %v1037_v18 = vadd.f32 %v2674_v57, %v1036_v8  ;;  %2703 = vtanh.f32 %v1241_v2  ;;  %v919_v20 = vadd.f32 %v3021_v24, %v918_v15 }
 0x182   :  { %v2686_v21 = vpop.eup %2685  ;;  %v1369_v22 = vadd.f32 %v2676_v63, %v1368_v13  ;;  %v1251_v26 = vadd.f32 %v3021_v24, %v1250_v16  ;;  %2705 = vtanh.f32 %v1256_v19  ;;  %v2267_v30 = vpop.f32.mrb[50].mxu0  ;;  %v735_v57 = vsel %vm402_vm0, %v734_v47, 0.0 }
 0x183   :  { %v2688_v27 = vpop.eup %2687  ;;  %v1038_v28 = vadd.f32 %v2686_v21, %v1037_v18  ;;  %v2347_v31 = vpop.f32.mrb[50].mxu1  ;;  %2707 = vtanh.f32 %v919_v20  ;;  %v934_v43 = vadd.f32 %v2267_v30, %v3021_v24  ;;  %736 = vadd.xlane.f32.xlu0 %v735_v57 }
 0x184   :  { %v2690_v32 = vpop.eup %2689  ;;  %v1370_v33 = vadd.f32 %v2688_v27, %v1369_v22  ;;  %v1266_v34 = vadd.f32 %v2347_v31, %v3021_v24  ;;  %v928_v35 = vpop.f32.mrb[51].mxu0  ;;  %2709 = vtanh.f32 %v1251_v26 }
 0x185   :  { %v1260_v36 = vpop.f32.mrb[51].mxu1  ;;  %v2692_v37 = vpop.eup %2691  ;;  %v1039_v38 = vadd.f32 %v2682_v12, %v1038_v28  ;;  %v929_v40 = vadd.f32 %v3021_v24, %v928_v35  ;;  %2711 = vtanh.f32 %v924_v25 }
 0x186   :  { %v2694_v41 = vpop.eup %2693  ;;  %v1371_v42 = vadd.f32 %v2684_v17, %v1370_v33  ;;  %v1261_v44 = vadd.f32 %v3021_v24, %v1260_v36  ;;  %2713 = vtanh.f32 %v1266_v34  ;;  %v2270_v48 = vpop.f32.mrb[52].mxu0 }
 0x187   :  { %v2696_v45 = vpop.eup %2695  ;;  %v1040_v46 = vadd.f32 %v2694_v41, %v1039_v38  ;;  %v2350_v49 = vpop.f32.mrb[52].mxu1  ;;  %2715 = vtanh.f32 %v929_v40 }
 0x188   :  { %v2698_v50 = vpop.eup %2697  ;;  %v1372_v51 = vadd.f32 %v2696_v45, %v1371_v42  ;;  %v1276_v52 = vadd.f32 %v2350_v49, %v3021_v24  ;;  %v938_v53 = vpop.f32.mrb[53].mxu0  ;;  %2717 = vtanh.f32 %v1261_v44  ;;  %v944_v24 = vadd.f32 %v3140_v58, %v2270_v48 }
 0x189   :  { %v1270_v54 = vpop.f32.mrb[53].mxu1  ;;  %v2700_v55 = vpop.eup %2699  ;;  %v1041_v56 = vadd.f32 %v2690_v32, %v1040_v46  ;;  %v939_v59 = vadd.f32 %v3140_v58, %v938_v53  ;;  %2719 = vtanh.f32 %v934_v43 }
 0x18a   :  { %v2702_v60 = vpop.eup %2701  ;;  %v1373_v61 = vadd.f32 %v2692_v37, %v1372_v51  ;;  %v1271_v62 = vadd.f32 %v3140_v58, %v1270_v54  ;;  %2721 = vtanh.f32 %v1276_v52  ;;  %v2273_v1 = vpop.f32.mrb[54].mxu0 }
 0x18b   :  { %v2704_v63 = vpop.eup %2703  ;;  %v1042_v0 = vadd.f32 %v2702_v60, %v1041_v56  ;;  %v2353_v2 = vpop.f32.mrb[54].mxu1  ;;  %2723 = vtanh.f32 %v939_v59  ;;  %v954_v14 = vadd.f32 %v3140_v58, %v2273_v1 }
 0x18c   :  { %v1374_v4 = vadd.f32 %v2704_v63, %v1373_v61  ;;  %v1286_v5 = vadd.f32 %v3140_v58, %v2353_v2  ;;  %v948_v6 = vpop.f32.mrb[55].mxu0  ;;  %v1280_v7 = vpop.f32.mrb[55].mxu1  ;;  %2725 = vtanh.f32 %v1271_v62 }
 0x18d   :  { %v2706_v8 = vpop.eup %2705  ;;  %v1043_v9 = vadd.f32 %v2698_v50, %v1042_v0  ;;  %v949_v10 = vadd.f32 %v3140_v58, %v948_v6  ;;  %v1281_v11 = vadd.f32 %v3140_v58, %v1280_v7  ;;  %2727 = vtanh.f32 %v944_v24 }
 0x18e   :  { %v2708_v12 = vpop.eup %2707  ;;  %v1375_v13 = vadd.f32 %v2700_v55, %v1374_v4  ;;  %2729 = vtanh.f32 %v1286_v5  ;;  %v2276_v17 = vpop.f32.mrb[56].mxu0 }
 0x18f   :  { %v2710_v15 = vpop.eup %2709  ;;  %v1044_v16 = vadd.f32 %v2708_v12, %v1043_v9  ;;  %v2356_v18 = vpop.f32.mrb[56].mxu1  ;;  %2731 = vtanh.f32 %v949_v10  ;;  %v964_v31 = vadd.f32 %v3140_v58, %v2276_v17 }
 0x190   :  { %v2712_v19 = vpop.eup %2711  ;;  %v1376_v20 = vadd.f32 %v2710_v15, %v1375_v13  ;;  %v1296_v21 = vadd.f32 %v3140_v58, %v2356_v18  ;;  %v958_v22 = vpop.f32.mrb[57].mxu0  ;;  %2733 = vtanh.f32 %v1281_v11 }
 0x191   :  { %v1290_v23 = vpop.f32.mrb[57].mxu1  ;;  %v2714_v25 = vpop.eup %2713  ;;  %v1045_v26 = vadd.f32 %v2712_v19, %v1044_v16  ;;  %v959_v27 = vadd.f32 %v3140_v58, %v958_v22  ;;  %2735 = vtanh.f32 %v954_v14 }
 0x192   :  { %v1291_v28 = vadd.f32 %v3140_v58, %v1290_v23  ;;  %v2716_v29 = vpop.eup %2715  ;;  %v1377_v30 = vadd.f32 %v2706_v8, %v1376_v20  ;;  %2737 = vtanh.f32 %v1296_v21  ;;  %v2279_v34 = vpop.f32.mrb[58].mxu0 }
 0x193   :  { %v2718_v32 = vpop.eup %2717  ;;  %v1046_v33 = vadd.f32 %v2716_v29, %v1045_v26  ;;  %v2359_v35 = vpop.f32.mrb[58].mxu1  ;;  %2739 = vtanh.f32 %v959_v27  ;;  %v974_v47 = vadd.f32 %v3140_v58, %v2279_v34 }
 0x194   :  { %v2720_v36 = vpop.eup %2719  ;;  %v1378_v37 = vadd.f32 %v2718_v32, %v1377_v30  ;;  %v1306_v38 = vadd.f32 %v3140_v58, %v2359_v35  ;;  %v968_v39 = vpop.f32.mrb[59].mxu0  ;;  %2741 = vtanh.f32 %v1291_v28 }
 0x195   :  { %v1300_v40 = vpop.f32.mrb[59].mxu1  ;;  %v2722_v41 = vpop.eup %2721  ;;  %v1047_v42 = vadd.f32 %v2720_v36, %v1046_v33  ;;  %v969_v43 = vadd.f32 %v3140_v58, %v968_v39  ;;  %2743 = vtanh.f32 %v964_v31 }
 0x196   :  { %v1301_v44 = vadd.f32 %v3140_v58, %v1300_v40  ;;  %v2724_v45 = vpop.eup %2723  ;;  %v1379_v46 = vadd.f32 %v2714_v25, %v1378_v37  ;;  %2745 = vtanh.f32 %v1306_v38  ;;  %v2282_v50 = vpop.f32.mrb[60].mxu0 }
 0x197   :  { %v2726_v48 = vpop.eup %2725  ;;  %v1048_v49 = vadd.f32 %v2724_v45, %v1047_v42  ;;  %v2362_v51 = vpop.f32.mrb[60].mxu1  ;;  %2747 = vtanh.f32 %v969_v43  ;;  %v984_v63 = vadd.f32 %v3140_v58, %v2282_v50 }
 0x198   :  { %v2728_v52 = vpop.eup %2727  ;;  %v1380_v53 = vadd.f32 %v2726_v48, %v1379_v46  ;;  %v1316_v54 = vadd.f32 %v3140_v58, %v2362_v51  ;;  %v978_v55 = vpop.f32.mrb[61].mxu0  ;;  %2749 = vtanh.f32 %v1301_v44 }
 0x199   :  { %v1310_v56 = vpop.f32.mrb[61].mxu1  ;;  %v2730_v57 = vpop.eup %2729  ;;  %v1049_v59 = vadd.f32 %v2728_v52, %v1048_v49  ;;  %v979_v60 = vadd.f32 %v3140_v58, %v978_v55  ;;  %2751 = vtanh.f32 %v974_v47 }
 0x19a   :  { %v1311_v61 = vadd.f32 %v3140_v58, %v1310_v56  ;;  %v2732_v24 = vpop.eup %2731  ;;  %v1381_v62 = vadd.f32 %v2722_v41, %v1380_v53  ;;  %2753 = vtanh.f32 %v1316_v54  ;;  %v2285_v2 = vpop.f32.mrb[62].mxu0 }
 0x19b   :  { %v2734_v0 = vpop.eup %2733  ;;  %v1050_v1 = vadd.f32 %v2732_v24, %v1049_v59  ;;  %v2365_v4 = vpop.f32.mrb[62].mxu1  ;;  %2755 = vtanh.f32 %v979_v60  ;;  %v994_v16 = vadd.f32 %v3140_v58, %v2285_v2 }
 0x19c   :  { %v2736_v5 = vpop.eup %2735  ;;  %v1382_v6 = vadd.f32 %v2734_v0, %v1381_v62  ;;  %v1326_v7 = vadd.f32 %v3140_v58, %v2365_v4  ;;  %v988_v8 = vpop.f32.mrb[63].mxu0  ;;  %2757 = vtanh.f32 %v1311_v61 }
 0x19d   :  { %v1320_v9 = vpop.f32.mrb[63].mxu1  ;;  %v2738_v10 = vpop.eup %2737  ;;  %v1051_v11 = vadd.f32 %v2736_v5, %v1050_v1  ;;  %v989_v12 = vadd.f32 %v3140_v58, %v988_v8  ;;  %2759 = vtanh.f32 %v984_v63  ;;  %v67_v63 = vlaneseq }
 0x19e   :  { %v1321_v13 = vadd.f32 %v3140_v58, %v1320_v9  ;;  %v2740_v14 = vpop.eup %2739  ;;  %v1383_v15 = vadd.f32 %v2730_v57, %v1382_v6  ;;  %2761 = vtanh.f32 %v1326_v7 }
 0x19f   :  { %v2742_v17 = vpop.eup %2741  ;;  %v1052_v18 = vadd.f32 %v2740_v14, %v1051_v11  ;;  %2763 = vtanh.f32 %v989_v12  ;;  %v68_v1 = vand.u32 127, %v67_v63 }
 0x1a0   :  { %v2744_v19 = vpop.eup %2743  ;;  %v1384_v20 = vadd.f32 %v2742_v17, %v1383_v15  ;;  %2765 = vtanh.f32 %v1321_v13 }
 0x1a1   :  { %v2746_v21 = vpop.eup %2745  ;;  %v1053_v22 = vadd.f32 %v2744_v19, %v1052_v18  ;;  %2767 = vtanh.f32 %v994_v16  ;;  %vm406_vm1 = vcmp.eq.s32.totalorder %v68_v1, 0  ;;  %vm738_vm2 = vcmp.eq.s32.totalorder %v68_v1, 1 }
 0x1a2   :  { %v2748_v23 = vpop.eup %2747  ;;  %v1385_v25 = vadd.f32 %v2738_v10, %v1384_v20  ;;  %vm1070_vm3 = vcmp.eq.s32.totalorder %v68_v1, 2  ;;  %vm1402_vm4 = vcmp.eq.s32.totalorder %v68_v1, 3 }
 0x1a3   :  { %v2750_v26 = vpop.eup %2749  ;;  %v1054_v27 = vadd.f32 %v2748_v23, %v1053_v22 }
 0x1a4   :  { %v2752_v28 = vpop.eup %2751  ;;  %v1386_v29 = vadd.f32 %v2750_v26, %v1385_v25 }
 0x1a5   :  { %v2754_v30 = vpop.eup %2753  ;;  %v1055_v31 = vadd.f32 %v2752_v28, %v1054_v27 }
 0x1a6   :  { %v2756_v32 = vpop.eup %2755  ;;  %v1387_v58 = vadd.f32 %v2746_v21, %v1386_v29 }
 0x1a7   :  { %v2758_v33 = vpop.eup %2757  ;;  %v1056_v34 = vadd.f32 %v2756_v32, %v1055_v31 }
 0x1a8   :  { %v2760_v35 = vpop.eup %2759  ;;  %v1388_v36 = vadd.f32 %v2758_v33, %v1387_v58 }
 0x1a9   :  { %v2762_v37 = vpop.eup %2761  ;;  %v1057_v38 = vadd.f32 %v2760_v35, %v1056_v34 }
 0x1aa   :  { %v2764_v39 = vpop.eup %2763  ;;  %v1389_v40 = vadd.f32 %v2754_v30, %v1388_v36 }
 0x1ab   :  { %v2766_v41 = vpop.eup %2765  ;;  %v1058_v42 = vadd.f32 %v2764_v39, %v1057_v38 }
 0x1ac   :  { %v2768_v43 = vpop.eup %2767  ;;  %v1390_v44 = vadd.f32 %v2766_v41, %v1389_v40 }
 0x1ad   :  { %v1059_v45 = vadd.f32 %v2768_v43, %v1058_v42 }
 0x1ae   :  { %v1391_v46 = vadd.f32 %v2762_v37, %v1390_v44 }
 0x1af   :  { %v1060_v47 = vrot.slane %v1059_v45, 4 }
 0x1b0   :  { %v1392_v48 = vrot.slane %v1391_v46, 4 }
 0x1b1   :  { %v1061_v49 = vadd.f32 %v1060_v47, %v1059_v45 }
 0x1b2   :  { %v1393_v50 = vadd.f32 %v1392_v48, %v1391_v46 }
 0x1b3   :  { %v1062_v51 = vrot.slane %v1061_v49, 2 }
 0x1b4   :  { %v1394_v52 = vrot.slane %v1393_v50, 2 }
 0x1b5   :  { %v1063_v53 = vadd.f32 %v1062_v51, %v1061_v49 }
 0x1b6   :  { %v1395_v54 = vadd.f32 %v1394_v52, %v1393_v50 }
 0x1b7   :  { %v1064_v55 = vrot.slane %v1063_v53, 1 }
 0x1b8   :  { %v1396_v56 = vrot.slane %v1395_v54, 1 }
 0x1b9   :  { %v1065_v57 = vadd.f32 %v1064_v55, %v1063_v53 }
 0x1ba   :  { %v1397_v59 = vadd.f32 %v1396_v56, %v1395_v54 }
 0x1bb   :  { %v1066_v60 = vmul.f32 %v1065_v57, %v3122_v3 }
 0x1bc   :  { %v1398_v24 = vmul.f32 %v1397_v59, %v3122_v3 }
 0x1bd   :  { %v1067_v61 = vsel %vm402_vm0, %v1066_v60, 0.0 }
 0x1be   :  { %1068 = vadd.xlane.f32.xlu1 %v1067_v61  ;;  %v1399_v62 = vsel %vm402_vm0, %v1398_v24, 0.0 }
 0x1c2   :  { %1400 = vadd.xlane.f32.xlu1 %v1399_v62 }
 0x20b   :  { %v405_v0 = vpop.xlane.xlu0 %404 }
 0x20c   :  { %v407_v5 = vsel %vm406_vm1, %v405_v0, 0.0 }
 0x210   :  { %v737_v2 = vpop.xlane.xlu0 %736 }
 0x211   :  { %v739_v6 = vsel %vm738_vm2, %v737_v2, %v407_v5 }
 0x24b   :  { %v1069_v4 = vpop.xlane.xlu1 %1068 }
 0x24c   :  { %v1071_v7 = vsel %vm1070_vm3, %v1069_v4, %v739_v6 }
 0x24f   :  { %v1401_v8 = vpop.xlane.xlu1 %1400 }
 0x250   :  { %v1403_v9 = vsel %vm1402_vm4, %v1401_v8, %v1071_v7 }
 0x251   :  { %v1404_v3 = vmul.f32 0.00390625, %v1403_v9 }
 0x253   :  { %v1406_v10 = vsel %vm1405_vm5, %v1404_v3, -inf }
 0x254   :  { %1407 = vmax.xlane.f32.xlu0 %v1406_v10 }
 0x2e1   :  { %v1408_v11 = vpop.xlane.xlu0 %1407 }
 0x2e2   :  { %v1409_v12 = vsub.f32 %v1404_v3, %v1408_v11 }
 0x2e4   :  { %v1410_v13 = vmul.f32 1.442695, %v1409_v12 }
 0x2e6   :  { %2769 = vpow2.f32 %v1410_v13 }
 0x2f0   :  { %v2770_v14 = vpop.eup %2769 }
 0x2f1   :  { %v1412_v15 = vsel %vm1405_vm5, %v2770_v14, 0.0 }
 0x2f2   :  { %1413 = vadd.xlane.f32.xlu1 %v1412_v15 }
 0x37f   :  { %v1414_v16 = vpop.xlane.xlu1 %1413 }
 0x380   :  { %2771 = vrcp.f32 %v1414_v16 }
 0x38a   :  { %v2772_v17 = vpop.eup %2771 }
 0x38b   :  { %v1416_v18 = vmul.f32 %v2772_v17, %v2770_v14 }
 0x38d   :  { %1417 = vst.msk [vmem:[#allocation8] sm:$0x1] %vm1405_vm5, %v1416_v18  ;;  %1619 = vrot.lane.b32.xlu1 %v1416_v18, %s2876_s2  ;;  %1518 = vrot.lane.b32.xlu0 %v1416_v18, %s2877_s24 }
 0x38e   :  { %2494 = vpush %v1416_v18 }
 0x391   :  { %1720 = vrot.lane.b32.xlu1 %v1416_v18, %s2878_s25 }
 0x392   :  { %2829 = shalt.err (!%p2826_p6)
}
 0x393   :  { %s2830_s7 = scalar_lea.hbm %s3591_s5, 16 }
 0x394   :  { %p2831_p7 = scmp.ne.s32.totalorder %s3591_s5, %s2830_s7  ;;  %p2834_p8 = scmp.lt.u32.totalorder %s2830_s7, %s3591_s5 }
 0x396   :  { %p2836_p9 = pnand %p2834_p8, %p2831_p7 }
 0x398   :  { %2839 = shalt.err (!%p2836_p9)
}
 0x399   :  { %1842 = dma.vmem_to_hbm [thread:$0]  %s1840_s27, 16, %s3591_s5, [#allocation9]   ;;  %v1418_v22 = vld [vmem:[#allocation2] sm:$0xff]  ;;  %v1486_v9 = vld [vmem:[#allocation2 + $0x8] sm:$0xff] }
 0x39a   :  { %v1419_v23 = vld [vmem:[#allocation2 + $0x20] sm:$0xff]  ;;  %v1487_v3 = vld [vmem:[#allocation2 + $0x28] sm:$0xff]  ;;  %s2880_s18 = smov [#allocation7]  }
 0x39b   :  { %v1420_v25 = vld [vmem:[#allocation2 + $0x40] sm:$0xff]  ;;  %v1488_v10 = vld [vmem:[#allocation2 + $0x48] sm:$0xff]  ;;  %s1826_s19 = sshll.u32 %s2880_s18, 4  ;;  %s1827_s19 = int_to_ptr.vmem [resolvable:$true] %s1826_s19 }
 0x39c   :  { %v1421_v26 = vld [vmem:[#allocation2 + $0x60] sm:$0xff]  ;;  %v1489_v15 = vld [vmem:[#allocation2 + $0x68] sm:$0xff]  ;;  %s2840_s1 = scalar_lea.vmem %s1827_s19, 4096  ;;  %p2845_p11 = scmp.lt.s32.totalorder %s1827_s19, %s1827_s19 }
 0x39d   :  { %v1422_v27 = vld [vmem:[#allocation2 + $0x80] sm:$0xff]  ;;  %v1490_v16 = vld [vmem:[#allocation2 + $0x88] sm:$0xff]  ;;  %p2841_p10 = scmp.ne.s32.totalorder %s1827_s19, %s2840_s1  ;;  %p2846_p12 = scmp.lt.s32.totalorder %s2840_s1, %s2840_s1 }
 0x39e   :  { %v1423_v29 = vld [vmem:[#allocation2 + $0xa0] sm:$0xff]  ;;  %v1491_v17 = vld [vmem:[#allocation2 + $0xa8] sm:$0xff] }
 0x39f   :  { %v1424_v30 = vld [vmem:[#allocation2 + $0xc0] sm:$0xff]  ;;  %p2847_p13 = por %p2846_p12, %p2845_p11 }
 0x3a0   :  { %v1425_v31 = vld [vmem:[#allocation2 + $0xe0] sm:$0xff] }
 0x3a1   :  { %v1426_v32 = vld [vmem:[#allocation2 + $0x100] sm:$0xff]  ;;  %p2848_p0 = pnand %p2847_p13, %p2841_p10 }
 0x3a2   :  { %v1427_v58 = vld [vmem:[#allocation2 + $0x120] sm:$0xff] }
 0x3a3   :  { %v1428_v33 = vld [vmem:[#allocation2 + $0x140] sm:$0xff] }
 0x3a4   :  { %v1429_v34 = vld [vmem:[#allocation2 + $0x160] sm:$0xff] }
 0x3a5   :  { %v1430_v35 = vld [vmem:[#allocation2 + $0x180] sm:$0xff] }
 0x3a6   :  { %v1431_v36 = vld [vmem:[#allocation2 + $0x1a0] sm:$0xff] }
 0x3a7   :  { %v1432_v37 = vld [vmem:[#allocation2 + $0x1c0] sm:$0xff] }
 0x3a8   :  { %v1433_v38 = vld [vmem:[#allocation2 + $0x1e0] sm:$0xff] }
 0x3a9   :  { %v1434_v39 = vld [vmem:[#allocation2 + $0x200] sm:$0xff] }
 0x3aa   :  { %v1435_v40 = vld [vmem:[#allocation2 + $0x220] sm:$0xff] }
 0x3ab   :  { %v1436_v41 = vld [vmem:[#allocation2 + $0x240] sm:$0xff] }
 0x3ac   :  { %v1437_v42 = vld [vmem:[#allocation2 + $0x260] sm:$0xff] }
 0x3ad   :  { %v1438_v43 = vld [vmem:[#allocation2 + $0x280] sm:$0xff] }
 0x3ae   :  { %v1439_v45 = vld [vmem:[#allocation2 + $0x2a0] sm:$0xff] }
 0x3af   :  { %v1440_v46 = vld [vmem:[#allocation2 + $0x2c0] sm:$0xff] }
 0x3b0   :  { %v1441_v47 = vld [vmem:[#allocation2 + $0x2e0] sm:$0xff] }
 0x3b1   :  { %v1442_v48 = vld [vmem:[#allocation2 + $0x300] sm:$0xff] }
 0x3b2   :  { %v1443_v53 = vld [vmem:[#allocation2 + $0x320] sm:$0xff] }
 0x3b3   :  { %v1444_v54 = vld [vmem:[#allocation2 + $0x340] sm:$0xff] }
 0x3b4   :  { %v1445_v55 = vld [vmem:[#allocation2 + $0x360] sm:$0xff] }
 0x3b5   :  { %v1446_v56 = vld [vmem:[#allocation2 + $0x380] sm:$0xff] }
 0x3b6   :  { %v1447_v24 = vld [vmem:[#allocation2 + $0x3a0] sm:$0xff] }
 0x3b7   :  { %v1448_v62 = vld [vmem:[#allocation2 + $0x3c0] sm:$0xff] }
 0x3b8   :  { %v1449_v63 = vld [vmem:[#allocation2 + $0x3e0] sm:$0xff] }
 0x3bf   :  { %s2495_s14 = spop %2494 }
 0x3c0   :  { %v3181_v28 = vstv %s2495_s14 }
 0x3c1   :  { %v3184_v44 = vmul.f32 %v3181_v28, %v1418_v22  ;;  %v3187_v49 = vmul.f32 %v3181_v28, %v1419_v23  ;;  %v3190_v50 = vmul.f32 %v3181_v28, %v1420_v25  ;;  %v3193_v51 = vmul.f32 %v3181_v28, %v1421_v26  ;;  %v1492_v22 = vld [vmem:[#allocation2 + $0xc8] sm:$0xff] }
 0x3c2   :  { %v3196_v52 = vmul.f32 %v3181_v28, %v1422_v27  ;;  %v3199_v57 = vmul.f32 %v3181_v28, %v1423_v29  ;;  %v3202_v59 = vmul.f32 %v3181_v28, %v1424_v30  ;;  %v3205_v60 = vmul.f32 %v3181_v28, %v1425_v31  ;;  %v1493_v23 = vld [vmem:[#allocation2 + $0xe8] sm:$0xff] }
 0x3c3   :  { %v3208_v61 = vmul.f32 %v3181_v28, %v1426_v32  ;;  %v3211_v0 = vmul.f32 %v3181_v28, %v1427_v58  ;;  %v3214_v1 = vmul.f32 %v3181_v28, %v1428_v33  ;;  %v3217_v2 = vmul.f32 %v3181_v28, %v1429_v34  ;;  %v1494_v25 = vld [vmem:[#allocation2 + $0x108] sm:$0xff] }
 0x3c4   :  { %v3220_v4 = vmul.f32 %v3181_v28, %v1430_v35  ;;  %v3223_v5 = vmul.f32 %v3181_v28, %v1431_v36  ;;  %v3226_v6 = vmul.f32 %v3181_v28, %v1432_v37  ;;  %v3229_v7 = vmul.f32 %v3181_v28, %v1433_v38  ;;  %v1495_v31 = vld [vmem:[#allocation2 + $0x128] sm:$0xff] }
 0x3c5   :  { %v3232_v8 = vmul.f32 %v3181_v28, %v1434_v39  ;;  %v3235_v11 = vmul.f32 %v3181_v28, %v1435_v40  ;;  %v3238_v12 = vmul.f32 %v3181_v28, %v1436_v41  ;;  %v3241_v13 = vmul.f32 %v3181_v28, %v1437_v42  ;;  %v1496_v32 = vld [vmem:[#allocation2 + $0x148] sm:$0xff] }
 0x3c6   :  { %3594 = vst [vmem:[#allocation14_spill] sm:$0xff] %v3223_v5  ;;  %3595 = vst [vmem:[#allocation15_spill] sm:$0xff] %v3226_v6  ;;  %v3244_v14 = vmul.f32 %v3181_v28, %v1438_v43  ;;  %v3247_v18 = vmul.f32 %v3181_v28, %v1439_v45  ;;  %v3259_v26 = vmul.f32 %v3181_v28, %v1443_v53  ;;  %v1497_v58 = vld [vmem:[#allocation2 + $0x168] sm:$0xff] }
 0x3c7   :  { %3596 = vst [vmem:[#allocation16_spill] sm:$0xff] %v3229_v7  ;;  %3597 = vst [vmem:[#allocation17_spill] sm:$0xff] %v3232_v8  ;;  %v3262_v27 = vmul.f32 %v3181_v28, %v1444_v54  ;;  %v3265_v29 = vmul.f32 %v3181_v28, %v1445_v55  ;;  %v3268_v30 = vmul.f32 %v3181_v28, %v1446_v56  ;;  %v1498_v37 = vld [vmem:[#allocation2 + $0x188] sm:$0xff] }
 0x3c8   :  { %3598 = vst [vmem:[#allocation18_spill] sm:$0xff] %v3235_v11  ;;  %3599 = vst [vmem:[#allocation19_spill] sm:$0xff] %v3238_v12  ;;  %v3271_v34 = vmul.f32 %v3181_v28, %v1447_v24  ;;  %v3274_v35 = vmul.f32 %v3181_v28, %v1448_v62  ;;  %v3277_v36 = vmul.f32 %v3181_v28, %v1449_v63  ;;  %v1499_v38 = vld [vmem:[#allocation2 + $0x1a8] sm:$0xff] }
 0x3c9   :  { %3600 = vst [vmem:[#allocation20_spill] sm:$0xff] %v3241_v13  ;;  %3601 = vst [vmem:[#allocation21_spill] sm:$0xff] %v3244_v14  ;;  %v1500_v39 = vld [vmem:[#allocation2 + $0x1c8] sm:$0xff] }
 0x3ca   :  { %3602 = vst [vmem:[#allocation22_spill] sm:$0xff] %v3247_v18  ;;  %3606 = vst [vmem:[#allocation26_spill] sm:$0xff] %v3259_v26  ;;  %v1501_v41 = vld [vmem:[#allocation2 + $0x1e8] sm:$0xff] }
 0x3cb   :  { %3607 = vst [vmem:[#allocation27_spill] sm:$0xff] %v3262_v27  ;;  %3608 = vst [vmem:[#allocation28_spill] sm:$0xff] %v3265_v29  ;;  %v1502_v42 = vld [vmem:[#allocation2 + $0x208] sm:$0xff] }
 0x3cc   :  { %3609 = vst [vmem:[#allocation29_spill] sm:$0xff] %v3268_v30  ;;  %3610 = vst [vmem:[#allocation30_spill] sm:$0xff] %v3271_v34  ;;  %v1503_v43 = vld [vmem:[#allocation2 + $0x228] sm:$0xff] }
 0x3cd   :  { %3611 = vst [vmem:[#allocation31_spill] sm:$0xff] %v3274_v35  ;;  %3612 = vst [vmem:[#allocation32_spill] sm:$0xff] %v3277_v36  ;;  %v1505_v53 = vld [vmem:[#allocation2 + $0x268] sm:$0xff] }
 0x3ce   :  { %v1506_v54 = vld [vmem:[#allocation2 + $0x288] sm:$0xff] }
 0x3cf   :  { %v1508_v63 = vld [vmem:[#allocation2 + $0x2c8] sm:$0xff] }
 0x3d0   :  { %v1509_v36 = vld [vmem:[#allocation2 + $0x2e8] sm:$0xff] }
 0x3d1   :  { %v1516_v14 = vld [vmem:[#allocation2 + $0x3c8] sm:$0xff] }
 0x3ff   :  { %v1620_v19 = vpop.permute.xlu1 %1619  ;;  %v1519_v20 = vpop.permute.xlu0 %1518 }
 0x400   :  { %2496 = vpush %v1519_v20  ;;  %v3253_v20 = vmul.f32 %v3181_v28, %v1441_v47 }
 0x401   :  { %2498 = vpush %v1620_v19  ;;  %v3250_v19 = vmul.f32 %v3181_v28, %v1440_v46 }
 0x402   :  { %3604 = vst [vmem:[#allocation24_spill] sm:$0xff] %v3253_v20 }
 0x403   :  { %v1721_v21 = vpop.permute.xlu1 %1720  ;;  %3603 = vst [vmem:[#allocation23_spill] sm:$0xff] %v3250_v19 }
 0x404   :  { %2500 = vpush %v1721_v21  ;;  %v3256_v21 = vmul.f32 %v3181_v28, %v1442_v48  ;;  %v1504_v48 = vld [vmem:[#allocation2 + $0x248] sm:$0xff] }
 0x405   :  { %v1507_v28 = vld [vmem:[#allocation2 + $0x2a8] sm:$0xff] }
 0x406   :  { %3605 = vst [vmem:[#allocation25_spill] sm:$0xff] %v3256_v21 }
 0x431   :  { %s2497_s5 = spop %2496 }
 0x432   :  { %v1521_v33 = vstv %s2497_s5  ;;  %s2499_s15 = spop %2498 }
 0x433   :  { %v3279_v40 = vstv %s2499_s15  ;;  %v1523_v45 = vmul.f32 %v1521_v33, %v1486_v9  ;;  %v1524_v46 = vmul.f32 %v1521_v33, %v1487_v3  ;;  %v1525_v47 = vmul.f32 %v1521_v33, %v1488_v10  ;;  %v1510_v9 = vld [vmem:[#allocation2 + $0x308] sm:$0xff] }
 0x434   :  { %3613 = vst [vmem:[#allocation33_spill] sm:$0xff] %v3279_v40  ;;  %v1526_v55 = vmul.f32 %v1521_v33, %v1489_v15  ;;  %v1527_v56 = vmul.f32 %v1521_v33, %v1490_v16  ;;  %v1528_v24 = vmul.f32 %v1521_v33, %v1491_v17  ;;  %v1529_v62 = vmul.f32 %v1521_v33, %v1492_v22  ;;  %v1511_v3 = vld [vmem:[#allocation2 + $0x328] sm:$0xff] }
 0x435   :  { %s2501_s16 = spop %2500  ;;  %v1530_v35 = vmul.f32 %v1521_v33, %v1493_v23  ;;  %v1531_v34 = vmul.f32 %v1521_v33, %v1494_v25  ;;  %v1532_v40 = vmul.f32 %v1521_v33, %v1495_v31  ;;  %v1533_v30 = vmul.f32 %v1521_v33, %v1496_v32  ;;  %v1512_v10 = vld [vmem:[#allocation2 + $0x348] sm:$0xff] }
 0x436   :  { %v3281_v29 = vstv %s2501_s16  ;;  %v1534_v27 = vmul.f32 %v1521_v33, %v1497_v58  ;;  %v1535_v26 = vmul.f32 %v1521_v33, %v1498_v37  ;;  %v1536_v21 = vmul.f32 %v1521_v33, %v1499_v38  ;;  %v1513_v15 = vld [vmem:[#allocation2 + $0x368] sm:$0xff] }
 0x437   :  { %3614 = vst [vmem:[#allocation34_spill] sm:$0xff] %v3281_v29  ;;  %v1514_v16 = vld [vmem:[#allocation2 + $0x388] sm:$0xff]  ;;  %v1537_v22 = vmul.f32 %v1521_v33, %v1500_v39  ;;  %v1538_v20 = vmul.f32 %v1521_v33, %v1501_v41  ;;  %v1539_v19 = vmul.f32 %v1521_v33, %v1502_v42  ;;  %v1540_v18 = vmul.f32 %v1521_v33, %v1503_v43 }
 0x438   :  { %v1515_v17 = vld [vmem:[#allocation2 + $0x3a8] sm:$0xff]  ;;  %v1541_v25 = vmul.f32 %v1521_v33, %v1504_v48  ;;  %v1542_v31 = vmul.f32 %v1521_v33, %v1505_v53  ;;  %v1543_v32 = vmul.f32 %v1521_v33, %v1506_v54  ;;  %v1544_v13 = vmul.f32 %v1521_v33, %v1507_v28  ;;  %v3621_v53 = vld [vmem:[#allocation20_spill] sm:$0xff] }
 0x439   :  { %v1517_v23 = vld [vmem:[#allocation2 + $0x3e8] sm:$0xff]  ;;  %v1545_v29 = vmul.f32 %v1521_v33, %v1508_v63  ;;  %v1546_v12 = vmul.f32 %v1521_v33, %v1509_v36  ;;  %v1547_v11 = vmul.f32 %v1521_v33, %v1510_v9  ;;  %v1548_v8 = vmul.f32 %v1521_v33, %v1511_v3  ;;  %v3627_v9 = vld [vmem:[#allocation24_spill] sm:$0xff] }
 0x43a   :  { %v1549_v58 = vmul.f32 %v1521_v33, %v1512_v10  ;;  %v1550_v37 = vmul.f32 %v1521_v33, %v1513_v15  ;;  %v1551_v38 = vmul.f32 %v1521_v33, %v1514_v16  ;;  %v1552_v7 = vmul.f32 %v1521_v33, %v1515_v17  ;;  %v3625_v28 = vld [vmem:[#allocation23_spill] sm:$0xff]  ;;  %v3629_v10 = vld [vmem:[#allocation25_spill] sm:$0xff]  ;;  %v3631_v16 = vld [vmem:[#allocation26_spill] sm:$0xff] }
 0x43b   :  { %v1553_v6 = vmul.f32 %v1521_v33, %v1516_v14  ;;  %v1554_v5 = vmul.f32 %v1521_v33, %v1517_v23  ;;  %v3284_v39 = vadd.f32 %v1523_v45, %v3184_v44  ;;  %v3287_v41 = vadd.f32 %v1524_v46, %v3187_v49  ;;  %v3616_v45 = vld [vmem:[#allocation15_spill] sm:$0xff] }
 0x43c   :  { %v3290_v42 = vadd.f32 %v1525_v47, %v3190_v50  ;;  %v3293_v43 = vadd.f32 %v1526_v55, %v3193_v51  ;;  %v3296_v36 = vadd.f32 %v1527_v56, %v3196_v52  ;;  %v3299_v48 = vadd.f32 %v1528_v24, %v3199_v57  ;;  %v1592_v46 = vld [vmem:[#allocation2 + $0xb0] sm:$0xff]  ;;  %v3622_v55 = vld [vmem:[#allocation21_spill] sm:$0xff] }
 0x43d   :  { %v3302_v14 = vadd.f32 %v1529_v62, %v3202_v59  ;;  %v3305_v44 = vadd.f32 %v1530_v35, %v3205_v60  ;;  %v3308_v49 = vadd.f32 %v1531_v34, %v3208_v61  ;;  %v3311_v50 = vadd.f32 %v1532_v40, %v3211_v0  ;;  %v3615_v59 = vld [vmem:[#allocation14_spill] sm:$0xff]  ;;  %v1587_v60 = vld [vmem:[#allocation2 + $0x10] sm:$0xff]  ;;  %v3618_v40 = vld [vmem:[#allocation17_spill] sm:$0xff] }
 0x43e   :  { %v3314_v51 = vadd.f32 %v1533_v30, %v3214_v1  ;;  %v3317_v52 = vadd.f32 %v1534_v27, %v3217_v2  ;;  %v3320_v57 = vadd.f32 %v1535_v26, %v3220_v4  ;;  %v3323_v33 = vadd.f32 %v1536_v21, %v3615_v59  ;;  %v1588_v35 = vld [vmem:[#allocation2 + $0x30] sm:$0xff]  ;;  %v3619_v30 = vld [vmem:[#allocation18_spill] sm:$0xff] }
 0x43f   :  { %v3326_v61 = vadd.f32 %v1537_v22, %v3616_v45  ;;  %v3617_v34 = vld [vmem:[#allocation16_spill] sm:$0xff]  ;;  %v3332_v1 = vadd.f32 %v1539_v19, %v3618_v40  ;;  %v3335_v2 = vadd.f32 %v1540_v18, %v3619_v30  ;;  %v3620_v21 = vld [vmem:[#allocation19_spill] sm:$0xff]  ;;  %v3341_v54 = vadd.f32 %v1542_v31, %v3621_v53 }
 0x440   :  { %v3329_v0 = vadd.f32 %v1538_v20, %v3617_v34  ;;  %v1589_v27 = vld [vmem:[#allocation2 + $0x50] sm:$0xff]  ;;  %v3338_v47 = vadd.f32 %v1541_v25, %v3620_v21  ;;  %v3344_v56 = vadd.f32 %v1543_v32, %v3622_v55  ;;  %v3623_v20 = vld [vmem:[#allocation22_spill] sm:$0xff]  ;;  %v3350_v63 = vadd.f32 %v1545_v29, %v3625_v28  ;;  %v3637_v29 = vld [vmem:[#allocation29_spill] sm:$0xff] }
 0x441   :  { %v1590_v4 = vld [vmem:[#allocation2 + $0x70] sm:$0xff]  ;;  %v3347_v24 = vadd.f32 %v1544_v13, %v3623_v20  ;;  %v3353_v3 = vadd.f32 %v1546_v12, %v3627_v9  ;;  %v3356_v15 = vadd.f32 %v1547_v11, %v3629_v10  ;;  %v3359_v17 = vadd.f32 %v1548_v8, %v3631_v16  ;;  %v3639_v12 = vld [vmem:[#allocation30_spill] sm:$0xff] }
 0x442   :  { %v1591_v26 = vld [vmem:[#allocation2 + $0x90] sm:$0xff]  ;;  %3626 = vst [vmem:[#allocation15_spill] sm:$0xff] %v3350_v63  ;;  %v3368_v45 = vadd.f32 %v1551_v38, %v3637_v29  ;;  %v3371_v34 = vadd.f32 %v1552_v7, %v3639_v12 }
 0x443   :  { %3624 = vst [vmem:[#allocation14_spill] sm:$0xff] %v3347_v24  ;;  %v1593_v19 = vld [vmem:[#allocation2 + $0xd0] sm:$0xff]  ;;  %3628 = vst [vmem:[#allocation16_spill] sm:$0xff] %v3353_v3 }
 0x444   :  { %v1594_v62 = vld [vmem:[#allocation2 + $0xf0] sm:$0xff]  ;;  %3630 = vst [vmem:[#allocation17_spill] sm:$0xff] %v3356_v15  ;;  %3632 = vst [vmem:[#allocation18_spill] sm:$0xff] %v3359_v17 }
 0x445   :  { %v1595_v18 = vld [vmem:[#allocation2 + $0x110] sm:$0xff]  ;;  %3638 = vst [vmem:[#allocation21_spill] sm:$0xff] %v3368_v45  ;;  %3640 = vst [vmem:[#allocation22_spill] sm:$0xff] %v3371_v34 }
 0x446   :  { %v1596_v22 = vld [vmem:[#allocation2 + $0x130] sm:$0xff] }
 0x447   :  { %v1597_v23 = vld [vmem:[#allocation2 + $0x150] sm:$0xff] }
 0x448   :  { %v1598_v25 = vld [vmem:[#allocation2 + $0x170] sm:$0xff] }
 0x449   :  { %v3633_v13 = vld [vmem:[#allocation27_spill] sm:$0xff]  ;;  %v3635_v32 = vld [vmem:[#allocation28_spill] sm:$0xff] }
 0x44a   :  { %v3362_v31 = vadd.f32 %v1549_v58, %v3633_v13  ;;  %v3365_v59 = vadd.f32 %v1550_v37, %v3635_v32  ;;  %v1599_v11 = vld [vmem:[#allocation2 + $0x190] sm:$0xff]  ;;  %v3645_v37 = vld [vmem:[#allocation33_spill] sm:$0xff] }
 0x44b   :  { %v1600_v40 = vld [vmem:[#allocation2 + $0x1b0] sm:$0xff]  ;;  %v1624_v9 = vmul.f32 %v3645_v37, %v1587_v60  ;;  %v1625_v38 = vmul.f32 %v3645_v37, %v1588_v35  ;;  %v1626_v13 = vmul.f32 %v3645_v37, %v1589_v27  ;;  %v1627_v32 = vmul.f32 %v3645_v37, %v1590_v4 }
 0x44c   :  { %3634 = vst [vmem:[#allocation19_spill] sm:$0xff] %v3362_v31  ;;  %3636 = vst [vmem:[#allocation20_spill] sm:$0xff] %v3365_v59  ;;  %v1601_v30 = vld [vmem:[#allocation2 + $0x1d0] sm:$0xff]  ;;  %v1629_v29 = vmul.f32 %v3645_v37, %v1592_v46  ;;  %v1631_v60 = vmul.f32 %v3645_v37, %v1594_v62  ;;  %v1632_v35 = vmul.f32 %v3645_v37, %v1595_v18 }
 0x44d   :  { %v3641_v8 = vld [vmem:[#allocation31_spill] sm:$0xff]  ;;  %v3643_v53 = vld [vmem:[#allocation32_spill] sm:$0xff]  ;;  %v1634_v4 = vmul.f32 %v3645_v37, %v1597_v23  ;;  %v1636_v46 = vmul.f32 %v3645_v37, %v1599_v11  ;;  %v1637_v45 = vmul.f32 %v3645_v37, %v1600_v40  ;;  %v1638_v62 = vmul.f32 %v3645_v37, %v1601_v30 }
 0x44e   :  { %v3374_v21 = vadd.f32 %v1553_v6, %v3641_v8  ;;  %v3377_v55 = vadd.f32 %v1554_v5, %v3643_v53  ;;  %v1602_v58 = vld [vmem:[#allocation2 + $0x1f0] sm:$0xff]  ;;  %v1628_v6 = vmul.f32 %v3645_v37, %v1591_v26  ;;  %v1630_v53 = vmul.f32 %v3645_v37, %v1593_v19 }
 0x44f   :  { %v1603_v20 = vld [vmem:[#allocation2 + $0x210] sm:$0xff]  ;;  %v1635_v26 = vmul.f32 %v3645_v37, %v1598_v25  ;;  %v1639_v18 = vmul.f32 %v3645_v37, %v1602_v58 }
 0x450   :  { %3642 = vst [vmem:[#allocation23_spill] sm:$0xff] %v3374_v21  ;;  %3644 = vst [vmem:[#allocation24_spill] sm:$0xff] %v3377_v55  ;;  %v1604_v28 = vld [vmem:[#allocation2 + $0x230] sm:$0xff]  ;;  %v1633_v55 = vmul.f32 %v3645_v37, %v1596_v22  ;;  %v1640_v22 = vmul.f32 %v3645_v37, %v1603_v20 }
 0x451   :  { %v1605_v10 = vld [vmem:[#allocation2 + $0x250] sm:$0xff]  ;;  %v1641_v17 = vmul.f32 %v3645_v37, %v1604_v28 }
 0x452   :  { %v1606_v16 = vld [vmem:[#allocation2 + $0x270] sm:$0xff]  ;;  %v1642_v23 = vmul.f32 %v3645_v37, %v1605_v10 }
 0x453   :  { %v1607_v7 = vld [vmem:[#allocation2 + $0x290] sm:$0xff]  ;;  %v1643_v25 = vmul.f32 %v3645_v37, %v1606_v16 }
 0x454   :  { %v1608_v5 = vld [vmem:[#allocation2 + $0x2b0] sm:$0xff]  ;;  %v1644_v11 = vmul.f32 %v3645_v37, %v1607_v7 }
 0x455   :  { %v1609_v12 = vld [vmem:[#allocation2 + $0x2d0] sm:$0xff]  ;;  %v1645_v40 = vmul.f32 %v3645_v37, %v1608_v5 }
 0x456   :  { %v1610_v8 = vld [vmem:[#allocation2 + $0x2f0] sm:$0xff]  ;;  %v1646_v63 = vmul.f32 %v3645_v37, %v1609_v12  ;;  %v3412_v12 = vadd.f32 %v1624_v9, %v3284_v39  ;;  %v3433_v39 = vadd.f32 %v1631_v60, %v3305_v44  ;;  %v1688_v44 = vld [vmem:[#allocation2 + $0x18] sm:$0xff] }
 0x457   :  { %v1611_v21 = vld [vmem:[#allocation2 + $0x310] sm:$0xff]  ;;  %v1647_v30 = vmul.f32 %v3645_v37, %v1610_v8  ;;  %v3415_v8 = vadd.f32 %v1625_v38, %v3287_v41  ;;  %v3436_v41 = vadd.f32 %v1632_v35, %v3308_v49  ;;  %v3454_v49 = vadd.f32 %v1638_v62, %v3326_v61  ;;  %v1693_v9 = vld [vmem:[#allocation2 + $0xb8] sm:$0xff] }
 0x458   :  { %v1612_v34 = vld [vmem:[#allocation2 + $0x330] sm:$0xff]  ;;  %v1648_v58 = vmul.f32 %v3645_v37, %v1611_v21  ;;  %v3421_v21 = vadd.f32 %v1627_v32, %v3293_v43  ;;  %v3442_v43 = vadd.f32 %v1634_v4, %v3314_v51  ;;  %v3460_v51 = vadd.f32 %v1640_v22, %v3332_v1  ;;  %v1694_v1 = vld [vmem:[#allocation2 + $0xd8] sm:$0xff] }
 0x459   :  { %v1613_v27 = vld [vmem:[#allocation2 + $0x350] sm:$0xff]  ;;  %v1649_v20 = vmul.f32 %v3645_v37, %v1612_v34  ;;  %v3418_v34 = vadd.f32 %v1626_v13, %v3290_v42  ;;  %v3439_v42 = vadd.f32 %v1633_v55, %v3311_v50  ;;  %v3457_v50 = vadd.f32 %v1639_v18, %v3329_v0  ;;  %v1690_v55 = vld [vmem:[#allocation2 + $0x58] sm:$0xff]  ;;  %v3646_v0 = vld [vmem:[#allocation14_spill] sm:$0xff] }
 0x45a   :  { %v1614_v59 = vld [vmem:[#allocation2 + $0x370] sm:$0xff]  ;;  %v1650_v28 = vmul.f32 %v3645_v37, %v1613_v27  ;;  %v3472_v61 = vadd.f32 %v1644_v11, %v3344_v56  ;;  %v3475_v38 = vadd.f32 %v1645_v40, %v3646_v0  ;;  %v1695_v13 = vld [vmem:[#allocation2 + $0xf8] sm:$0xff]  ;;  %v3662_v18 = vld [vmem:[#allocation22_spill] sm:$0xff] }
 0x45b   :  { %v1615_v31 = vld [vmem:[#allocation2 + $0x390] sm:$0xff]  ;;  %v1651_v24 = vmul.f32 %v3645_v37, %v1614_v59  ;;  %v3427_v59 = vadd.f32 %v1629_v29, %v3299_v48  ;;  %v3448_v48 = vadd.f32 %v1636_v46, %v3320_v57  ;;  %v1691_v57 = vld [vmem:[#allocation2 + $0x78] sm:$0xff] }
 0x45c   :  { %v1616_v19 = vld [vmem:[#allocation2 + $0x3b0] sm:$0xff]  ;;  %v1652_v10 = vmul.f32 %v3645_v37, %v1615_v31  ;;  %v3424_v31 = vadd.f32 %v1628_v6, %v3296_v36  ;;  %v3445_v36 = vadd.f32 %v1635_v26, %v3317_v52  ;;  %v3463_v52 = vadd.f32 %v1641_v17, %v3335_v2  ;;  %3647 = vst [vmem:[#allocation25_spill] sm:$0xff] %v3475_v38  ;;  %v1696_v2 = vld [vmem:[#allocation2 + $0x118] sm:$0xff] }
 0x45d   :  { %v1617_v15 = vld [vmem:[#allocation2 + $0x3d0] sm:$0xff]  ;;  %v1653_v16 = vmul.f32 %v3645_v37, %v1616_v19  ;;  %v1697_v56 = vld [vmem:[#allocation2 + $0x138] sm:$0xff] }
 0x45e   :  { %v1618_v3 = vld [vmem:[#allocation2 + $0x3f0] sm:$0xff]  ;;  %v1654_v7 = vmul.f32 %v3645_v37, %v1617_v15  ;;  %v1689_v15 = vld [vmem:[#allocation2 + $0x38] sm:$0xff] }
 0x45f   :  { %v1655_v5 = vmul.f32 %v3645_v37, %v1618_v3  ;;  %v3430_v3 = vadd.f32 %v1630_v53, %v3302_v14  ;;  %v3451_v14 = vadd.f32 %v1637_v45, %v3323_v33  ;;  %v1692_v37 = vld [vmem:[#allocation2 + $0x98] sm:$0xff]  ;;  %v3466_v33 = vadd.f32 %v1642_v23, %v3338_v47  ;;  %v3648_v17 = vld [vmem:[#allocation15_spill] sm:$0xff] }
 0x460   :  { %v3469_v45 = vadd.f32 %v1643_v25, %v3341_v54  ;;  %v3478_v32 = vadd.f32 %v1646_v63, %v3648_v17  ;;  %v3650_v6 = vld [vmem:[#allocation16_spill] sm:$0xff]  ;;  %v3652_v47 = vld [vmem:[#allocation17_spill] sm:$0xff]  ;;  %v3654_v54 = vld [vmem:[#allocation18_spill] sm:$0xff]  ;;  %v3499_v22 = vadd.f32 %v1653_v16, %v3662_v18 }
 0x461   :  { %v3481_v29 = vadd.f32 %v1647_v30, %v3650_v6  ;;  %v3484_v53 = vadd.f32 %v1648_v58, %v3652_v47  ;;  %v3487_v60 = vadd.f32 %v1649_v20, %v3654_v54  ;;  %v1698_v35 = vld [vmem:[#allocation2 + $0x158] sm:$0xff]  ;;  %v3656_v4 = vld [vmem:[#allocation19_spill] sm:$0xff] }
 0x462   :  { %3649 = vst [vmem:[#allocation26_spill] sm:$0xff] %v3478_v32  ;;  %v1699_v27 = vld [vmem:[#allocation2 + $0x178] sm:$0xff]  ;;  %v3490_v26 = vadd.f32 %v1650_v28, %v3656_v4  ;;  %3663 = vst [vmem:[#allocation33_spill] sm:$0xff] %v3499_v22  ;;  %v3664_v40 = vld [vmem:[#allocation23_spill] sm:$0xff] }
 0x463   :  { %3651 = vst [vmem:[#allocation27_spill] sm:$0xff] %v3481_v29  ;;  %3653 = vst [vmem:[#allocation28_spill] sm:$0xff] %v3484_v53  ;;  %v3658_v46 = vld [vmem:[#allocation20_spill] sm:$0xff]  ;;  %v3660_v63 = vld [vmem:[#allocation21_spill] sm:$0xff]  ;;  %v3502_v30 = vadd.f32 %v1654_v7, %v3664_v40 }
 0x464   :  { %3655 = vst [vmem:[#allocation29_spill] sm:$0xff] %v3487_v60  ;;  %3657 = vst [vmem:[#allocation30_spill] sm:$0xff] %v3490_v26  ;;  %v3493_v19 = vadd.f32 %v1651_v24, %v3658_v46  ;;  %v3496_v62 = vadd.f32 %v1652_v10, %v3660_v63  ;;  %v1700_v23 = vld [vmem:[#allocation2 + $0x198] sm:$0xff]  ;;  %v3668_v24 = vld [vmem:[#allocation34_spill] sm:$0xff] }
 0x465   :  { %v1701_v25 = vld [vmem:[#allocation2 + $0x1b8] sm:$0xff]  ;;  %3665 = vst [vmem:[#allocation14_spill] sm:$0xff] %v3502_v30  ;;  %v1725_v6 = vmul.f32 %v3668_v24, %v1688_v44  ;;  %v1726_v10 = vmul.f32 %v3668_v24, %v1689_v15  ;;  %v1727_v4 = vmul.f32 %v3668_v24, %v1690_v55  ;;  %v1728_v46 = vmul.f32 %v3668_v24, %v1691_v57 }
 0x466   :  { %3659 = vst [vmem:[#allocation31_spill] sm:$0xff] %v3493_v19  ;;  %3661 = vst [vmem:[#allocation32_spill] sm:$0xff] %v3496_v62  ;;  %v1702_v11 = vld [vmem:[#allocation2 + $0x1d8] sm:$0xff]  ;;  %v1729_v7 = vmul.f32 %v3668_v24, %v1692_v37  ;;  %v1730_v63 = vmul.f32 %v3668_v24, %v1693_v9  ;;  %v1732_v44 = vmul.f32 %v3668_v24, %v1695_v13 }
 0x467   :  { %v3666_v58 = vld [vmem:[#allocation24_spill] sm:$0xff]  ;;  %v1733_v15 = vmul.f32 %v3668_v24, %v1696_v2  ;;  %v1735_v57 = vmul.f32 %v3668_v24, %v1698_v35  ;;  %v1736_v37 = vmul.f32 %v3668_v24, %v1699_v27  ;;  %v1737_v9 = vmul.f32 %v3668_v24, %v1700_v23 }
 0x468   :  { %v3505_v20 = vadd.f32 %v1655_v5, %v3666_v58  ;;  %v1703_v28 = vld [vmem:[#allocation2 + $0x1f8] sm:$0xff]  ;;  %v1731_v58 = vmul.f32 %v3668_v24, %v1694_v1  ;;  %v1738_v62 = vmul.f32 %v3668_v24, %v1701_v25  ;;  %v1739_v13 = vmul.f32 %v3668_v24, %v1702_v11 }
 0x469   :  { %v1704_v0 = vld [vmem:[#allocation2 + $0x218] sm:$0xff]  ;;  %v1740_v2 = vmul.f32 %v3668_v24, %v1703_v28 }
 0x46a   :  { %3667 = vst [vmem:[#allocation15_spill] sm:$0xff] %v3505_v20  ;;  %v1705_v17 = vld [vmem:[#allocation2 + $0x238] sm:$0xff]  ;;  %v1734_v20 = vmul.f32 %v3668_v24, %v1697_v56  ;;  %v1741_v56 = vmul.f32 %v3668_v24, %v1704_v0 }
 0x46b   :  { %v1706_v47 = vld [vmem:[#allocation2 + $0x258] sm:$0xff]  ;;  %v1742_v60 = vmul.f32 %v3668_v24, %v1705_v17 }
 0x46c   :  { %v1707_v54 = vld [vmem:[#allocation2 + $0x278] sm:$0xff]  ;;  %v1743_v35 = vmul.f32 %v3668_v24, %v1706_v47 }
 0x46d   :  { %v1708_v16 = vld [vmem:[#allocation2 + $0x298] sm:$0xff]  ;;  %v1744_v27 = vmul.f32 %v3668_v24, %v1707_v54 }
 0x46e   :  { %v1709_v5 = vld [vmem:[#allocation2 + $0x2b8] sm:$0xff]  ;;  %v1745_v23 = vmul.f32 %v3668_v24, %v1708_v16 }
 0x46f   :  { %v1710_v18 = vld [vmem:[#allocation2 + $0x2d8] sm:$0xff]  ;;  %v1746_v25 = vmul.f32 %v3668_v24, %v1709_v5 }
 0x470   :  { %v1711_v40 = vld [vmem:[#allocation2 + $0x2f8] sm:$0xff]  ;;  %v1747_v32 = vmul.f32 %v3668_v24, %v1710_v18  ;;  %v1757_v18 = vadd.f32 %v1725_v6, %v3412_v12  ;;  %v1767_v12 = vadd.f32 %v1735_v57, %v3442_v43  ;;  %v1777_v43 = vadd.f32 %v1745_v23, %v3472_v61 }
 0x471   :  { %v1712_v30 = vld [vmem:[#allocation2 + $0x318] sm:$0xff]  ;;  %v1748_v11 = vmul.f32 %v3668_v24, %v1711_v40  ;;  %v1758_v40 = vadd.f32 %v1726_v10, %v3415_v8  ;;  %v1768_v8 = vadd.f32 %v1736_v37, %v3445_v36 }
 0x472   :  { %v1713_v22 = vld [vmem:[#allocation2 + $0x338] sm:$0xff]  ;;  %v1749_v28 = vmul.f32 %v3668_v24, %v1712_v30  ;;  %v1759_v30 = vadd.f32 %v1727_v4, %v3418_v34  ;;  %1789 = vst [vmem:[#allocation7] sm:$0xff] %v1757_v18  ;;  %v1769_v34 = vadd.f32 %v1737_v9, %v3448_v48  ;;  %1799 = vst [vmem:[#allocation7 + $0x50] sm:$0xff] %v1767_v12 }
 0x473   :  { %v1714_v55 = vld [vmem:[#allocation2 + $0x358] sm:$0xff]  ;;  %v1750_v0 = vmul.f32 %v3668_v24, %v1713_v22  ;;  %v1760_v22 = vadd.f32 %v1728_v46, %v3421_v21  ;;  %1790 = vst [vmem:[#allocation7 + $0x8] sm:$0xff] %v1758_v40  ;;  %v1770_v21 = vadd.f32 %v1738_v62, %v3451_v14  ;;  %1800 = vst [vmem:[#allocation7 + $0x58] sm:$0xff] %v1768_v8  ;;  %v3670_v14 = vld [vmem:[#allocation26_spill] sm:$0xff] }
 0x474   :  { %v1715_v19 = vld [vmem:[#allocation2 + $0x378] sm:$0xff]  ;;  %v1751_v17 = vmul.f32 %v3668_v24, %v1714_v55  ;;  %v1761_v55 = vadd.f32 %v1729_v7, %v3424_v31  ;;  %1791 = vst [vmem:[#allocation7 + $0x10] sm:$0xff] %v1759_v30  ;;  %v1771_v31 = vadd.f32 %v1739_v13, %v3454_v49  ;;  %1801 = vst [vmem:[#allocation7 + $0x60] sm:$0xff] %v1769_v34 }
 0x475   :  { %v1716_v26 = vld [vmem:[#allocation2 + $0x398] sm:$0xff]  ;;  %v1752_v38 = vmul.f32 %v3668_v24, %v1715_v19  ;;  %v1762_v19 = vadd.f32 %v1730_v63, %v3427_v59  ;;  %1792 = vst [vmem:[#allocation7 + $0x18] sm:$0xff] %v1760_v22  ;;  %v1772_v59 = vadd.f32 %v1740_v2, %v3457_v50  ;;  %1802 = vst [vmem:[#allocation7 + $0x68] sm:$0xff] %v1770_v21  ;;  %v3671_v50 = vld [vmem:[#allocation27_spill] sm:$0xff] }
 0x476   :  { %v1717_v1 = vld [vmem:[#allocation2 + $0x3b8] sm:$0xff]  ;;  %v1753_v47 = vmul.f32 %v3668_v24, %v1716_v26  ;;  %v1763_v26 = vadd.f32 %v1731_v58, %v3430_v3  ;;  %1793 = vst [vmem:[#allocation7 + $0x20] sm:$0xff] %v1761_v55  ;;  %v1773_v3 = vadd.f32 %v1741_v56, %v3460_v51  ;;  %v1779_v49 = vadd.f32 %v1747_v32, %v3670_v14  ;;  %v3678_v32 = vld [vmem:[#allocation14_spill] sm:$0xff]  ;;  %v3679_v63 = vld [vmem:[#allocation15_spill] sm:$0xff] }
 0x477   :  { %v1718_v53 = vld [vmem:[#allocation2 + $0x3d8] sm:$0xff]  ;;  %v1754_v54 = vmul.f32 %v3668_v24, %v1717_v1  ;;  %v1764_v1 = vadd.f32 %v1732_v44, %v3433_v39  ;;  %1794 = vst [vmem:[#allocation7 + $0x28] sm:$0xff] %v1762_v19  ;;  %v1774_v39 = vadd.f32 %v1742_v60, %v3463_v52  ;;  %v1780_v51 = vadd.f32 %v1748_v11, %v3671_v50 }
 0x478   :  { %v1719_v29 = vld [vmem:[#allocation2 + $0x3f8] sm:$0xff]  ;;  %v1755_v16 = vmul.f32 %v3668_v24, %v1718_v53  ;;  %v1765_v53 = vadd.f32 %v1733_v15, %v3436_v41  ;;  %1795 = vst [vmem:[#allocation7 + $0x30] sm:$0xff] %v1763_v26  ;;  %v1775_v41 = vadd.f32 %v1743_v35, %v3466_v33  ;;  %1803 = vst [vmem:[#allocation7 + $0x70] sm:$0xff] %v1771_v31 }
 0x479   :  { %v1756_v5 = vmul.f32 %v3668_v24, %v1719_v29  ;;  %v1766_v29 = vadd.f32 %v1734_v20, %v3439_v42  ;;  %1796 = vst [vmem:[#allocation7 + $0x38] sm:$0xff] %v1764_v1  ;;  %v1776_v42 = vadd.f32 %v1744_v27, %v3469_v45  ;;  %v3669_v36 = vld [vmem:[#allocation25_spill] sm:$0xff]  ;;  %v3672_v52 = vld [vmem:[#allocation28_spill] sm:$0xff]  ;;  %1804 = vst [vmem:[#allocation7 + $0x78] sm:$0xff] %v1772_v59 }
 0x47a   :  { %1797 = vst [vmem:[#allocation7 + $0x40] sm:$0xff] %v1765_v53  ;;  %v1778_v48 = vadd.f32 %v1746_v25, %v3669_v36  ;;  %v1781_v60 = vadd.f32 %v1749_v28, %v3672_v52  ;;  %v3673_v62 = vld [vmem:[#allocation29_spill] sm:$0xff]  ;;  %1805 = vst [vmem:[#allocation7 + $0x80] sm:$0xff] %v1773_v3  ;;  %v3674_v45 = vld [vmem:[#allocation30_spill] sm:$0xff]  ;;  %v1787_v7 = vadd.f32 %v1755_v16, %v3678_v32 }
 0x47b   :  { %1798 = vst [vmem:[#allocation7 + $0x48] sm:$0xff] %v1766_v29  ;;  %v1782_v33 = vadd.f32 %v1750_v0, %v3673_v62  ;;  %1806 = vst [vmem:[#allocation7 + $0x88] sm:$0xff] %v1774_v39  ;;  %v1783_v61 = vadd.f32 %v1751_v17, %v3674_v45  ;;  %v3675_v20 = vld [vmem:[#allocation31_spill] sm:$0xff]  ;;  %v3676_v6 = vld [vmem:[#allocation32_spill] sm:$0xff]  ;;  %v1788_v58 = vadd.f32 %v1756_v5, %v3679_v63 }
 0x47c   :  { %v1784_v24 = vadd.f32 %v1752_v38, %v3675_v20  ;;  %v1785_v10 = vadd.f32 %v1753_v47, %v3676_v6  ;;  %v3677_v4 = vld [vmem:[#allocation33_spill] sm:$0xff]  ;;  %1807 = vst [vmem:[#allocation7 + $0x90] sm:$0xff] %v1775_v41  ;;  %1808 = vst [vmem:[#allocation7 + $0x98] sm:$0xff] %v1776_v42 }
 0x47d   :  { %v1786_v46 = vadd.f32 %v1754_v54, %v3677_v4  ;;  %1809 = vst [vmem:[#allocation7 + $0xa0] sm:$0xff] %v1777_v43  ;;  %1810 = vst [vmem:[#allocation7 + $0xa8] sm:$0xff] %v1778_v48 }
 0x47e   :  { %1811 = vst [vmem:[#allocation7 + $0xb0] sm:$0xff] %v1779_v49  ;;  %1812 = vst [vmem:[#allocation7 + $0xb8] sm:$0xff] %v1780_v51 }
 0x47f   :  { %1813 = vst [vmem:[#allocation7 + $0xc0] sm:$0xff] %v1781_v60  ;;  %1814 = vst [vmem:[#allocation7 + $0xc8] sm:$0xff] %v1782_v33 }
 0x480   :  { %1815 = vst [vmem:[#allocation7 + $0xd0] sm:$0xff] %v1783_v61  ;;  %1816 = vst [vmem:[#allocation7 + $0xd8] sm:$0xff] %v1784_v24 }
 0x481   :  { %1817 = vst [vmem:[#allocation7 + $0xe0] sm:$0xff] %v1785_v10  ;;  %1818 = vst [vmem:[#allocation7 + $0xe8] sm:$0xff] %v1786_v46 }
 0x482   :  { %1819 = vst [vmem:[#allocation7 + $0xf0] sm:$0xff] %v1787_v7  ;;  %1820 = vst [vmem:[#allocation7 + $0xf8] sm:$0xff] %v1788_v58 }
 0x483   :  { %2851 = shalt.err (!%p2848_p0)
}
 0x484   :  { %s2852_s22 = scalar_lea.hbm %s3590_s4, 4096 }
 0x485   :  { %p2853_p1 = scmp.ne.s32.totalorder %s3590_s4, %s2852_s22  ;;  %p2856_p2 = scmp.lt.u32.totalorder %s2852_s22, %s3590_s4 }
 0x487   :  { %p2858_p3 = pnand %p2856_p2, %p2853_p1 }
 0x489   :  { %2861 = shalt.err (!%p2858_p3)
}
 0x48a   :  { %1832 = dma.vmem_to_hbm [thread:$0]  %s1827_s19, 4096, %s3590_s4, [#allocation4], %s2874_s0, %s2874_s0, %s2875_s17  }
 0x48b   :  { %2866 = dma.done.wait [#allocation4], 4096  }
 0x48c   :  { %2867 = vsyncadd [#allocation4], 4294963200 }
 0x48d   :  { %2868 = dma.done.wait [#allocation9], 16  }
 0x48e   :  { %2869 = vsyncadd [#allocation9], 4294967280 }
 0x48f   :  { %1849 = vsyncpa [#allocation3], 1 }
 0x490   :  { %1850 = vsyncpa [#allocation6], 1 }
 0x491   :  { %1851 = vsyncpa [#allocation4], 1 }
 0x492   :  { %1852 = vsyncpa [#allocation9], 1 }

</bundles_post_ra>
